<compile_context>
chip_gen: v7x
topology: tpu7x:2x2x1
jax: 0.10.0
libtpu: 0.0.40
codegen_flags: <defaults>
</compile_context>

<pallas_src>
import functools

import jax
import jax.numpy as jnp
from jax.experimental import pallas as pl
from jax.experimental.pallas import tpu as pltpu

EPS = 1e-5  # torch nn.LayerNorm default


# ----------------------------- Fused Pallas kernel -----------------------------

def _lm_fused_kernel(idx_ref, tok_ref, pos_ref,
                     ln1g_ref, ln1b_ref, wk_ref, wv_ref, wp_ref, bp_ref,
                     ln2g_ref, ln2b_ref, w1_ref, b1_ref, w2_ref, b2_ref,
                     lnfg_ref, lnfb_ref, wlm_ref, blm_ref,
                     o_ref, att_scr, *, n_layers, n_head, B, T):
    C = tok_ref.shape[1]
    BT = B * T
    hs = C // n_head
    scale = C ** (-0.5)          # quirk: scaled by n_embd, not head_size
    NEG = jnp.float32(-1e30)     # finite mask fill (NaN-proof vs -inf)

    # ---- fused embedding gather: one-hot (BT, Vpad) @ tok_emb (Vpad, C) on MXU ----
    ids = idx_ref[...]                                        # (BT, 1) int32
    vocab_lanes = jax.lax.broadcasted_iota(jnp.int32, (BT, tok_ref.shape[0]), 1)
    onehot = jnp.where(vocab_lanes == ids, 1.0, 0.0).astype(jnp.float32)
    x = jnp.dot(onehot, tok_ref[...], preferred_element_type=jnp.float32)   # (BT, C)
    pos = pos_ref[...][:T]                                    # (T, C), static slice
    x = (x.reshape(B, T, C) + pos[None]).reshape(BT, C)

    # Causal mask built ONCE (rows = query t on axis 1, cols = key s on axis 2).
    qi = jax.lax.broadcasted_iota(jnp.int32, (1, T, T), 1)
    ki = jax.lax.broadcasted_iota(jnp.int32, (1, T, T), 2)
    causal = ki <= qi                                         # keep s <= t

    def ln(y, g, b):
        mu = jnp.mean(y, axis=-1, keepdims=True)
        var = jnp.mean((y - mu) ** 2, axis=-1, keepdims=True)
        return (y - mu) * jax.lax.rsqrt(var + EPS) * g + b

    for l in range(n_layers):                                 # static unroll (small L)
        # ---- multi-head attention on ln1(x) ----
        h_in = ln(x, ln1g_ref[l], ln1b_ref[l])                # (BT, C) f32
        h16 = h_in.astype(jnp.bfloat16)                       # bf16 matmul operands,
        k2 = jnp.dot(h16, wk_ref[l], preferred_element_type=jnp.float32)   # f32 accumulate
        v2 = jnp.dot(h16, wv_ref[l], preferred_element_type=jnp.float32)
        k3 = k2.reshape(B, T, C)
        v3 = v2.reshape(B, T, C)

        for h in range(n_head):                               # only the tiny (T,T) part per head
            kh = k3[:, :, h * hs:(h + 1) * hs]                # (B, T, hs) lane slice
            vh = v3[:, :, h * hs:(h + 1) * hs]
            # quirk: q = k (torch module uses self.key for the query too)
            w = jnp.einsum('btd,bsd->bts', kh, kh,
                           preferred_element_type=jnp.float32) * scale     # (B, T, T)
            w = jnp.where(causal, w, NEG)
            # quirk: softmax over the QUERY axis (torch dim=1) -> axis 1 here
            w = w - jnp.max(w, axis=1, keepdims=True)
            p = jnp.exp(w)
            p = p * pl.reciprocal(jnp.sum(p, axis=1, keepdims=True), approx=True)
            # write directly into this head's static lane slice (no concatenate)
            att_scr[:, :, h * hs:(h + 1) * hs] = jnp.einsum(
                'bts,bsd->btd', p, vh, preferred_element_type=jnp.float32)

        cat = att_scr[...].reshape(BT, C)
        x = x + jnp.dot(cat.astype(jnp.bfloat16), wp_ref[l],
                        preferred_element_type=jnp.float32) + bp_ref[l]

        # ---- feed-forward on ln2(x) ----
        h2 = ln(x, ln2g_ref[l], ln2b_ref[l])
        hid = jnp.dot(h2.astype(jnp.bfloat16), w1_ref[l],
                      preferred_element_type=jnp.float32) + b1_ref[l]
        hid = jnp.maximum(hid, 0.0)                           # ReLU (f32)
        x = x + jnp.dot(hid.astype(jnp.bfloat16), w2_ref[l],
                        preferred_element_type=jnp.float32) + b2_ref[l]

    # ---- final layernorm + LM head (vocab padded to lane-dense 128) ----
    x = ln(x, lnfg_ref[...], lnfb_ref[...])
    o_ref[...] = jnp.dot(x.astype(jnp.bfloat16), wlm_ref[...],
                         preferred_element_type=jnp.float32) + blm_ref[...]
    # TODO(synk): attention / proj / FFN dropout treated as identity (eval mode).


# ----------------------------- Parameter packing (one-time) -----------------------------

def pack_params(params):
    """Stack per-layer params, pad vocab dims to 128 lanes, cast matmul weights to bf16.

    Done ONCE at init so the jitted forward path does no repacking."""
    V, C = params["tok_emb"].shape
    Vp_out = pl.cdiv(params["w_lm"].shape[1], 128) * 128      # 65 -> 128 (lane-dense logits)
    Vp_emb = pl.cdiv(V, 128) * 128                            # 65 -> 128 (one-hot gather)

    def stk(name, dtype=jnp.float32):
        return jnp.stack([blk[name] for blk in params["blocks"]], axis=0).astype(dtype)

    return {
        "tok_emb": jnp.pad(params["tok_emb"], ((0, Vp_emb - V), (0, 0))).astype(jnp.float32),
        "pos_emb": params["pos_emb"].astype(jnp.float32),
        "ln1_g": stk("ln1_g")[:, None, :], "ln1_b": stk("ln1_b")[:, None, :],
        "ln2_g": stk("ln2_g")[:, None, :], "ln2_b": stk("ln2_b")[:, None, :],
        "wk": stk("wk", jnp.bfloat16), "wv": stk("wv", jnp.bfloat16),
        "wproj": stk("wproj", jnp.bfloat16), "bproj": stk("bproj")[:, None, :],
        "w1": stk("w1", jnp.bfloat16), "b1": stk("b1")[:, None, :],
        "w2": stk("w2", jnp.bfloat16), "b2": stk("b2")[:, None, :],
        "lnf_g": params["lnf_g"][None, :].astype(jnp.float32),
        "lnf_b": params["lnf_b"][None, :].astype(jnp.float32),
        "w_lm": jnp.pad(params["w_lm"],
                        ((0, 0), (0, Vp_out - params["w_lm"].shape[1]))).astype(jnp.bfloat16),
        "b_lm": jnp.pad(params["b_lm"],
                        (0, Vp_out - params["b_lm"].shape[0]))[None, :].astype(jnp.float32),
    }


# ----------------------------- Jitted forward wrapper -----------------------------

@functools.partial(jax.jit, static_argnames=("n_head", "vocab_size"))
def language_model_forward(packed, idx, *, n_head, vocab_size):
    """Equivalent of LanguageModel.forward(idx, targets=None) -> (logits, None)."""
    B, T = idx.shape
    C = packed["tok_emb"].shape[1]
    Vp = packed["w_lm"].shape[1]
    L = packed["wk"].shape[0]
    BT = B * T

    idx2d = idx.reshape(BT, 1).astype(jnp.int32)              # fed straight into the kernel

    operands = (idx2d, packed["tok_emb"], packed["pos_emb"],
                packed["ln1_g"], packed["ln1_b"], packed["wk"], packed["wv"],
                packed["wproj"], packed["bproj"], packed["ln2_g"], packed["ln2_b"],
                packed["w1"], packed["b1"], packed["w2"], packed["b2"],
                packed["lnf_g"], packed["lnf_b"], packed["w_lm"], packed["b_lm"])

    # Advisory cost estimate (gather + per-layer projections/scores/FFN + LM head).
    hs = C // n_head
    flops = (L * (3 * 2 * BT * C * C + 2 * 2 * BT * C * 4 * C
                  + 2 * 2 * B * n_head * T * T * hs)
             + 2 * BT * packed["tok_emb"].shape[0] * C + 2 * BT * C * Vp)
    transcendentals = L * (B * n_head * T * T + 2 * BT) + BT
    bytes_accessed = sum(int(a.size) * a.dtype.itemsize for a in operands) + BT * Vp * 4

    kern = functools.partial(_lm_fused_kernel, n_layers=L, n_head=n_head, B=B, T=T)
    logits_padded = pl.pallas_call(
        kern,
        out_shape=jax.ShapeDtypeStruct((BT, Vp), jnp.float32),
        scratch_shapes=[pltpu.VMEM((B, T, C), jnp.float32)],   # per-head attn output slab
        cost_estimate=pl.CostEstimate(flops=int(flops),
                                      transcendentals=int(transcendentals),
                                      bytes_accessed=int(bytes_accessed)),
    )(*operands)

    logits = logits_padded[:, :vocab_size].reshape(B, T, vocab_size)
    return logits, None                                        # targets=None path


# ----------------------------- Parameter init -----------------------------

def init_params(key, vocab_size, n_embd, block_size, n_layers, n_head):
    ks = jax.random.split(key, 4 + n_layers)

    def norm(k, shape, scale=0.02):
        return (scale * jax.random.normal(k, shape)).astype(jnp.float32)

    params = {
        "tok_emb": norm(ks[0], (vocab_size, n_embd)),
        "pos_emb": norm(ks[1], (block_size, n_embd)),
        "lnf_g": jnp.ones((n_embd,), jnp.float32),
        "lnf_b": jnp.zeros((n_embd,), jnp.float32),
        "w_lm": norm(ks[2], (n_embd, vocab_size)),
        "b_lm": norm(ks[3], (vocab_size,)),
        "blocks": [],
    }
    for l in range(n_layers):
        bk = jax.random.split(ks[4 + l], 8)
        params["blocks"].append({
            # per-head key/value projections stored concatenated: columns
            # [h*hs : (h+1)*hs] belong to head h (matches torch.cat over heads).
            "wk": norm(bk[0], (n_embd, n_embd)),
            "wv": norm(bk[1], (n_embd, n_embd)),
            "wproj": norm(bk[2], (n_embd, n_embd)),
            "bproj": norm(bk[3], (n_embd,)),
            "w1": norm(bk[4], (n_embd, 4 * n_embd)),
            "b1": norm(bk[5], (4 * n_embd,)),
            "w2": norm(bk[6], (4 * n_embd, n_embd)),
            "b2": norm(bk[7], (n_embd,)),
            "ln1_g": jnp.ones((n_embd,), jnp.float32),
            "ln1_b": jnp.zeros((n_embd,), jnp.float32),
            "ln2_g": jnp.ones((n_embd,), jnp.float32),
            "ln2_b": jnp.zeros((n_embd,), jnp.float32),
        })
    return params


# ----------------------------- Pure-JAX reference -----------------------------

def reference_forward(params, idx, n_head):
    T = idx.shape[1]
    x = params["tok_emb"][idx] + params["pos_emb"][:T][None]
    C = x.shape[-1]
    hs = C // n_head

    def ln(y, g, b):
        mu = y.mean(-1, keepdims=True)
        var = ((y - mu) ** 2).mean(-1, keepdims=True)
        return (y - mu) / jnp.sqrt(var + EPS) * g + b

    ii = jnp.arange(T)[:, None]
    jj = jnp.arange(T)[None, :]
    for blk in params["blocks"]:
        h_in = ln(x, blk["ln1_g"], blk["ln1_b"])
        outs = []
        for h in range(n_head):
            k = h_in @ blk["wk"][:, h * hs:(h + 1) * hs]
            q = k                                     # same quirk as torch code
            wei = jnp.einsum("btd,bsd->bts", q, k) * C ** (-0.5)
            wei = jnp.where(jj <= ii, wei, -jnp.inf)
            wei = jax.nn.softmax(wei, axis=1)         # softmax over query axis (quirk)
            v = h_in @ blk["wv"][:, h * hs:(h + 1) * hs]
            outs.append(jnp.einsum("bts,bsd->btd", wei, v))
        x = x + (jnp.concatenate(outs, -1) @ blk["wproj"] + blk["bproj"])
        h2 = ln(x, blk["ln2_g"], blk["ln2_b"])
        x = x + (jnp.maximum(h2 @ blk["w1"] + blk["b1"], 0.0) @ blk["w2"] + blk["b2"])
    x = ln(x, params["lnf_g"], params["lnf_b"])
    return x @ params["w_lm"] + params["b_lm"]


# ----------------------------- Main -----------------------------

if __name__ == "__main__":
    vocab_size, n_embd, block_size = 65, 32, 8
    n_layers, n_head = 2, 4
    B, T = 2, 8

    key = jax.random.PRNGKey(0)
    kp, ki = jax.random.split(key)
    params = init_params(kp, vocab_size, n_embd, block_size, n_layers, n_head)
    idx = jax.random.randint(ki, (B, T), 0, vocab_size)

    # One-time packing (stack layers, pad vocab, cast matmul weights to bf16),
    # hoisted out of the jitted forward path.
    packed = pack_params(params)

    logits, loss = language_model_forward(packed, idx, n_head=n_head, vocab_size=vocab_size)
    logits = jax.block_until_ready(logits)

    ref = reference_forward(params, idx, n_head)
    assert logits.shape == (B, T, vocab_size)
    assert loss is None
    err = float(jnp.max(jnp.abs(logits - ref)))
    assert jnp.allclose(logits, ref, rtol=2e-2, atol=2e-2), err

    print("KERNEL_OK")
</pallas_src>

<mosaic_0001>
module attributes {stable_mosaic.version = 11 : i64} {
  func.func @_lm_fused_kernel(%arg0: memref<16x1xi32, #tpu.memory_space<vmem>>, %arg1: memref<128x32xf32, #tpu.memory_space<vmem>>, %arg2: memref<8x32xf32, #tpu.memory_space<vmem>>, %arg3: memref<2x1x32xf32, #tpu.memory_space<vmem>>, %arg4: memref<2x1x32xf32, #tpu.memory_space<vmem>>, %arg5: memref<2x32x32xbf16, #tpu.memory_space<vmem>>, %arg6: memref<2x32x32xbf16, #tpu.memory_space<vmem>>, %arg7: memref<2x32x32xbf16, #tpu.memory_space<vmem>>, %arg8: memref<2x1x32xf32, #tpu.memory_space<vmem>>, %arg9: memref<2x1x32xf32, #tpu.memory_space<vmem>>, %arg10: memref<2x1x32xf32, #tpu.memory_space<vmem>>, %arg11: memref<2x32x128xbf16, #tpu.memory_space<vmem>>, %arg12: memref<2x1x128xf32, #tpu.memory_space<vmem>>, %arg13: memref<2x128x32xbf16, #tpu.memory_space<vmem>>, %arg14: memref<2x1x32xf32, #tpu.memory_space<vmem>>, %arg15: memref<1x32xf32, #tpu.memory_space<vmem>>, %arg16: memref<1x32xf32, #tpu.memory_space<vmem>>, %arg17: memref<32x128xbf16, #tpu.memory_space<vmem>>, %arg18: memref<1x128xf32, #tpu.memory_space<vmem>>, %arg19: memref<16x128xf32, #tpu.memory_space<vmem>>, %arg20: memref<2x8x32xf32, #tpu.memory_space<vmem>>) attributes {dimension_semantics = [], scalar_prefetch = 0 : i64, scratch_operands = 1 : i64, tpu.core_type = #tpu.core_type<tc>} {
    %c0 = arith.constant 0 : index
    %c0_0 = arith.constant 0 : index
    %0 = vector.load %arg0[%c0, %c0_0] : memref<16x1xi32, #tpu.memory_space<vmem>>, vector<16x1xi32>
    %1 = tpu.iota {dimensions = array<i32: 1>} : vector<16x128xi32>
    %2 = vector.broadcast %0 : vector<16x1xi32> to vector<16x128xi32>
    %3 = arith.cmpi eq, %1, %2 : vector<16x128xi32>
    %cst = arith.constant 1.000000e+00 : f32
    %cst_1 = arith.constant 0.000000e+00 : f32
    %4 = vector.broadcast %cst : f32 to vector<16x128xf32>
    %5 = vector.broadcast %cst_1 : f32 to vector<16x128xf32>
    %6 = arith.select %3, %4, %5 : vector<16x128xi1>, vector<16x128xf32>
    %c0_2 = arith.constant 0 : index
    %c0_3 = arith.constant 0 : index
    %7 = vector.load %arg1[%c0_2, %c0_3] : memref<128x32xf32, #tpu.memory_space<vmem>>, vector<128x32xf32>
    %cst_4 = arith.constant dense<0.000000e+00> : vector<16x32xf32>
    %8 = tpu.matmul %6, %7, %cst_4 {dimension_numbers = #tpu.dot_dimension_numbers<[1], [0], [0], [1], [0, 0, 1, 1], [], []>} : vector<16x128xf32>, vector<128x32xf32>, vector<16x32xf32> -> vector<16x32xf32>
    %c0_5 = arith.constant 0 : index
    %c0_6 = arith.constant 0 : index
    %9 = vector.load %arg2[%c0_5, %c0_6] : memref<8x32xf32, #tpu.memory_space<vmem>>, vector<8x32xf32>
    %10 = vector.shape_cast %8 : vector<16x32xf32> to vector<2x8x32xf32>
    %11 = vector.shape_cast %9 : vector<8x32xf32> to vector<1x8x32xf32>
    %12 = vector.broadcast %11 : vector<1x8x32xf32> to vector<2x8x32xf32>
    %13 = arith.addf %10, %12 : vector<2x8x32xf32>
    %14 = vector.shape_cast %13 : vector<2x8x32xf32> to vector<16x32xf32>
    %15 = tpu.iota {dimensions = array<i32: 1>} : vector<1x8x8xi32>
    %16 = tpu.iota {dimensions = array<i32: 2>} : vector<1x8x8xi32>
    %17 = arith.cmpi sle, %16, %15 : vector<1x8x8xi32>
    %c0_7 = arith.constant 0 : index
    %c0_8 = arith.constant 0 : index
    %c0_9 = arith.constant 0 : index
    %18 = vector.load %arg3[%c0_7, %c0_8, %c0_9] : memref<2x1x32xf32, #tpu.memory_space<vmem>>, vector<1x1x32xf32>
    %19 = vector.shape_cast %18 : vector<1x1x32xf32> to vector<1x32xf32>
    %c0_10 = arith.constant 0 : index
    %c0_11 = arith.constant 0 : index
    %c0_12 = arith.constant 0 : index
    %20 = vector.load %arg4[%c0_10, %c0_11, %c0_12] : memref<2x1x32xf32, #tpu.memory_space<vmem>>, vector<1x1x32xf32>
    %21 = vector.shape_cast %20 : vector<1x1x32xf32> to vector<1x32xf32>
    %cst_13 = arith.constant dense<0.000000e+00> : vector<16xf32>
    %22 = vector.multi_reduction <add>, %14, %cst_13 [1] : vector<16x32xf32> to vector<16xf32>
    %23 = vector.shape_cast %22 : vector<16xf32> to vector<16x1xf32>
    %cst_14 = arith.constant 3.200000e+01 : f32
    %24 = vector.broadcast %cst_14 : f32 to vector<16x1xf32>
    %25 = arith.divf %23, %24 : vector<16x1xf32>
    %26 = vector.broadcast %25 : vector<16x1xf32> to vector<16x32xf32>
    %27 = arith.subf %14, %26 : vector<16x32xf32>
    %28 = arith.mulf %27, %27 : vector<16x32xf32>
    %cst_15 = arith.constant dense<0.000000e+00> : vector<16xf32>
    %29 = vector.multi_reduction <add>, %28, %cst_15 [1] : vector<16x32xf32> to vector<16xf32>
    %30 = vector.shape_cast %29 : vector<16xf32> to vector<16x1xf32>
    %cst_16 = arith.constant 3.200000e+01 : f32
    %31 = vector.broadcast %cst_16 : f32 to vector<16x1xf32>
    %32 = arith.divf %30, %31 : vector<16x1xf32>
    %33 = vector.broadcast %25 : vector<16x1xf32> to vector<16x32xf32>
    %34 = arith.subf %14, %33 : vector<16x32xf32>
    %cst_17 = arith.constant 9.99999974E-6 : f32
    %35 = vector.broadcast %cst_17 : f32 to vector<16x1xf32>
    %36 = arith.addf %32, %35 : vector<16x1xf32>
    %37 = math.rsqrt %36 : vector<16x1xf32>
    %38 = vector.broadcast %37 : vector<16x1xf32> to vector<16x32xf32>
    %39 = arith.mulf %34, %38 : vector<16x32xf32>
    %40 = vector.broadcast %19 : vector<1x32xf32> to vector<16x32xf32>
    %41 = arith.mulf %39, %40 : vector<16x32xf32>
    %42 = vector.broadcast %21 : vector<1x32xf32> to vector<16x32xf32>
    %43 = arith.addf %41, %42 : vector<16x32xf32>
    %44 = arith.truncf %43 : vector<16x32xf32> to vector<16x32xbf16>
    %c0_18 = arith.constant 0 : index
    %c0_19 = arith.constant 0 : index
    %c0_20 = arith.constant 0 : index
    %45 = vector.load %arg5[%c0_18, %c0_19, %c0_20] : memref<2x32x32xbf16, #tpu.memory_space<vmem>>, vector<1x32x32xbf16>
    %46 = vector.shape_cast %45 : vector<1x32x32xbf16> to vector<32x32xbf16>
    %cst_21 = arith.constant dense<0.000000e+00> : vector<16x32xf32>
    %47 = tpu.matmul %44, %46, %cst_21 {dimension_numbers = #tpu.dot_dimension_numbers<[1], [0], [0], [1], [0, 0, 1, 1], [], []>} : vector<16x32xbf16>, vector<32x32xbf16>, vector<16x32xf32> -> vector<16x32xf32>
    %c0_22 = arith.constant 0 : index
    %c0_23 = arith.constant 0 : index
    %c0_24 = arith.constant 0 : index
    %48 = vector.load %arg6[%c0_22, %c0_23, %c0_24] : memref<2x32x32xbf16, #tpu.memory_space<vmem>>, vector<1x32x32xbf16>
    %49 = vector.shape_cast %48 : vector<1x32x32xbf16> to vector<32x32xbf16>
    %cst_25 = arith.constant dense<0.000000e+00> : vector<16x32xf32>
    %50 = tpu.matmul %44, %49, %cst_25 {dimension_numbers = #tpu.dot_dimension_numbers<[1], [0], [0], [1], [0, 0, 1, 1], [], []>} : vector<16x32xbf16>, vector<32x32xbf16>, vector<16x32xf32> -> vector<16x32xf32>
    %51 = vector.shape_cast %47 : vector<16x32xf32> to vector<2x8x32xf32>
    %52 = vector.shape_cast %50 : vector<16x32xf32> to vector<2x8x32xf32>
    %53 = vector.extract_strided_slice %51 {offsets = [0, 0, 0], sizes = [2, 8, 8], strides = [1, 1, 1]} : vector<2x8x32xf32> to vector<2x8x8xf32>
    %54 = vector.extract_strided_slice %52 {offsets = [0, 0, 0], sizes = [2, 8, 8], strides = [1, 1, 1]} : vector<2x8x32xf32> to vector<2x8x8xf32>
    "tpu.trace_start"() <{level = 10 : i32, message = "btd,bsd->bts"}> : () -> ()
    %cst_26 = arith.constant dense<0.000000e+00> : vector<2x8x8xf32>
    %55 = tpu.matmul %53, %53, %cst_26 {dimension_numbers = #tpu.dot_dimension_numbers<[2], [2], [1], [1], [0, 0, 0, 1, 1, 1], [0], [0]>} : vector<2x8x8xf32>, vector<2x8x8xf32>, vector<2x8x8xf32> -> vector<2x8x8xf32>
    "tpu.trace_stop"() : () -> ()
    %cst_27 = arith.constant 0.176776692 : f32
    %56 = vector.broadcast %cst_27 : f32 to vector<2x8x8xf32>
    %57 = arith.mulf %55, %56 : vector<2x8x8xf32>
    %cst_28 = arith.constant -1.000000e+30 : f32
    %58 = vector.shape_cast %17 : vector<1x8x8xi1> to vector<1x8x8xi1>
    %59 = vector.broadcast %58 : vector<1x8x8xi1> to vector<2x8x8xi1>
    %60 = vector.broadcast %cst_28 : f32 to vector<2x8x8xf32>
    %61 = arith.select %59, %57, %60 : vector<2x8x8xi1>, vector<2x8x8xf32>
    %cst_29 = arith.constant dense<0xFF800000> : vector<2x8xf32>
    %62 = vector.multi_reduction <maximumf>, %61, %cst_29 [1] : vector<2x8x8xf32> to vector<2x8xf32>
    %63 = vector.shape_cast %62 : vector<2x8xf32> to vector<2x1x8xf32>
    %64 = vector.broadcast %63 : vector<2x1x8xf32> to vector<2x8x8xf32>
    %65 = arith.subf %61, %64 : vector<2x8x8xf32>
    %66 = math.exp %65 : vector<2x8x8xf32>
    %cst_30 = arith.constant dense<0.000000e+00> : vector<2x8xf32>
    %67 = vector.multi_reduction <add>, %66, %cst_30 [1] : vector<2x8x8xf32> to vector<2x8xf32>
    %68 = vector.shape_cast %67 : vector<2x8xf32> to vector<2x1x8xf32>
    %69 = tpu.reciprocal %68 {approx = true} : vector<2x1x8xf32> -> vector<2x1x8xf32>
    %70 = vector.broadcast %69 : vector<2x1x8xf32> to vector<2x8x8xf32>
    %71 = arith.mulf %66, %70 : vector<2x8x8xf32>
    "tpu.trace_start"() <{level = 10 : i32, message = "bts,bsd->btd"}> : () -> ()
    %cst_31 = arith.constant dense<0.000000e+00> : vector<2x8x8xf32>
    %72 = tpu.matmul %71, %54, %cst_31 {dimension_numbers = #tpu.dot_dimension_numbers<[2], [1], [1], [2], [0, 0, 0, 1, 1, 2], [0], [0]>} : vector<2x8x8xf32>, vector<2x8x8xf32>, vector<2x8x8xf32> -> vector<2x8x8xf32>
    "tpu.trace_stop"() : () -> ()
    %c0_32 = arith.constant 0 : index
    %c0_33 = arith.constant 0 : index
    %c0_34 = arith.constant 0 : index
    %73 = vector.load %arg20[%c0_32, %c0_33, %c0_34] : memref<2x8x32xf32, #tpu.memory_space<vmem>>, vector<2x8x8xf32>
    tpu.vector_store %arg20[%c0_32, %c0_33, %c0_34], %72 {strides = array<i32>} : memref<2x8x32xf32, #tpu.memory_space<vmem>>, vector<2x8x8xf32>,
    %74 = vector.extract_strided_slice %51 {offsets = [0, 0, 8], sizes = [2, 8, 8], strides = [1, 1, 1]} : vector<2x8x32xf32> to vector<2x8x8xf32>
    %75 = vector.extract_strided_slice %52 {offsets = [0, 0, 8], sizes = [2, 8, 8], strides = [1, 1, 1]} : vector<2x8x32xf32> to vector<2x8x8xf32>
    "tpu.trace_start"() <{level = 10 : i32, message = "btd,bsd->bts"}> : () -> ()
    %cst_35 = arith.constant dense<0.000000e+00> : vector<2x8x8xf32>
    %76 = tpu.matmul %74, %74, %cst_35 {dimension_numbers = #tpu.dot_dimension_numbers<[2], [2], [1], [1], [0, 0, 0, 1, 1, 1], [0], [0]>} : vector<2x8x8xf32>, vector<2x8x8xf32>, vector<2x8x8xf32> -> vector<2x8x8xf32>
    "tpu.trace_stop"() : () -> ()
    %cst_36 = arith.constant 0.176776692 : f32
    %77 = vector.broadcast %cst_36 : f32 to vector<2x8x8xf32>
    %78 = arith.mulf %76, %77 : vector<2x8x8xf32>
    %cst_37 = arith.constant -1.000000e+30 : f32
    %79 = vector.shape_cast %17 : vector<1x8x8xi1> to vector<1x8x8xi1>
    %80 = vector.broadcast %79 : vector<1x8x8xi1> to vector<2x8x8xi1>
    %81 = vector.broadcast %cst_37 : f32 to vector<2x8x8xf32>
    %82 = arith.select %80, %78, %81 : vector<2x8x8xi1>, vector<2x8x8xf32>
    %cst_38 = arith.constant dense<0xFF800000> : vector<2x8xf32>
    %83 = vector.multi_reduction <maximumf>, %82, %cst_38 [1] : vector<2x8x8xf32> to vector<2x8xf32>
    %84 = vector.shape_cast %83 : vector<2x8xf32> to vector<2x1x8xf32>
    %85 = vector.broadcast %84 : vector<2x1x8xf32> to vector<2x8x8xf32>
    %86 = arith.subf %82, %85 : vector<2x8x8xf32>
    %87 = math.exp %86 : vector<2x8x8xf32>
    %cst_39 = arith.constant dense<0.000000e+00> : vector<2x8xf32>
    %88 = vector.multi_reduction <add>, %87, %cst_39 [1] : vector<2x8x8xf32> to vector<2x8xf32>
    %89 = vector.shape_cast %88 : vector<2x8xf32> to vector<2x1x8xf32>
    %90 = tpu.reciprocal %89 {approx = true} : vector<2x1x8xf32> -> vector<2x1x8xf32>
    %91 = vector.broadcast %90 : vector<2x1x8xf32> to vector<2x8x8xf32>
    %92 = arith.mulf %87, %91 : vector<2x8x8xf32>
    "tpu.trace_start"() <{level = 10 : i32, message = "bts,bsd->btd"}> : () -> ()
    %cst_40 = arith.constant dense<0.000000e+00> : vector<2x8x8xf32>
    %93 = tpu.matmul %92, %75, %cst_40 {dimension_numbers = #tpu.dot_dimension_numbers<[2], [1], [1], [2], [0, 0, 0, 1, 1, 2], [0], [0]>} : vector<2x8x8xf32>, vector<2x8x8xf32>, vector<2x8x8xf32> -> vector<2x8x8xf32>
    "tpu.trace_stop"() : () -> ()
    %c0_41 = arith.constant 0 : index
    %c0_42 = arith.constant 0 : index
    %c8 = arith.constant 8 : index
    %94 = vector.load %arg20[%c0_41, %c0_42, %c8] : memref<2x8x32xf32, #tpu.memory_space<vmem>>, vector<2x8x8xf32>
    tpu.vector_store %arg20[%c0_41, %c0_42, %c8], %93 {strides = array<i32>} : memref<2x8x32xf32, #tpu.memory_space<vmem>>, vector<2x8x8xf32>,
    %95 = vector.extract_strided_slice %51 {offsets = [0, 0, 16], sizes = [2, 8, 8], strides = [1, 1, 1]} : vector<2x8x32xf32> to vector<2x8x8xf32>
    %96 = vector.extract_strided_slice %52 {offsets = [0, 0, 16], sizes = [2, 8, 8], strides = [1, 1, 1]} : vector<2x8x32xf32> to vector<2x8x8xf32>
    "tpu.trace_start"() <{level = 10 : i32, message = "btd,bsd->bts"}> : () -> ()
    %cst_43 = arith.constant dense<0.000000e+00> : vector<2x8x8xf32>
    %97 = tpu.matmul %95, %95, %cst_43 {dimension_numbers = #tpu.dot_dimension_numbers<[2], [2], [1], [1], [0, 0, 0, 1, 1, 1], [0], [0]>} : vector<2x8x8xf32>, vector<2x8x8xf32>, vector<2x8x8xf32> -> vector<2x8x8xf32>
    "tpu.trace_stop"() : () -> ()
    %cst_44 = arith.constant 0.176776692 : f32
    %98 = vector.broadcast %cst_44 : f32 to vector<2x8x8xf32>
    %99 = arith.mulf %97, %98 : vector<2x8x8xf32>
    %cst_45 = arith.constant -1.000000e+30 : f32
    %100 = vector.shape_cast %17 : vector<1x8x8xi1> to vector<1x8x8xi1>
    %101 = vector.broadcast %100 : vector<1x8x8xi1> to vector<2x8x8xi1>
    %102 = vector.broadcast %cst_45 : f32 to vector<2x8x8xf32>
    %103 = arith.select %101, %99, %102 : vector<2x8x8xi1>, vector<2x8x8xf32>
    %cst_46 = arith.constant dense<0xFF800000> : vector<2x8xf32>
    %104 = vector.multi_reduction <maximumf>, %103, %cst_46 [1] : vector<2x8x8xf32> to vector<2x8xf32>
    %105 = vector.shape_cast %104 : vector<2x8xf32> to vector<2x1x8xf32>
    %106 = vector.broadcast %105 : vector<2x1x8xf32> to vector<2x8x8xf32>
    %107 = arith.subf %103, %106 : vector<2x8x8xf32>
    %108 = math.exp %107 : vector<2x8x8xf32>
    %cst_47 = arith.constant dense<0.000000e+00> : vector<2x8xf32>
    %109 = vector.multi_reduction <add>, %108, %cst_47 [1] : vector<2x8x8xf32> to vector<2x8xf32>
    %110 = vector.shape_cast %109 : vector<2x8xf32> to vector<2x1x8xf32>
    %111 = tpu.reciprocal %110 {approx = true} : vector<2x1x8xf32> -> vector<2x1x8xf32>
    %112 = vector.broadcast %111 : vector<2x1x8xf32> to vector<2x8x8xf32>
    %113 = arith.mulf %108, %112 : vector<2x8x8xf32>
    "tpu.trace_start"() <{level = 10 : i32, message = "bts,bsd->btd"}> : () -> ()
    %cst_48 = arith.constant dense<0.000000e+00> : vector<2x8x8xf32>
    %114 = tpu.matmul %113, %96, %cst_48 {dimension_numbers = #tpu.dot_dimension_numbers<[2], [1], [1], [2], [0, 0, 0, 1, 1, 2], [0], [0]>} : vector<2x8x8xf32>, vector<2x8x8xf32>, vector<2x8x8xf32> -> vector<2x8x8xf32>
    "tpu.trace_stop"() : () -> ()
    %c0_49 = arith.constant 0 : index
    %c0_50 = arith.constant 0 : index
    %c16 = arith.constant 16 : index
    %115 = vector.load %arg20[%c0_49, %c0_50, %c16] : memref<2x8x32xf32, #tpu.memory_space<vmem>>, vector<2x8x8xf32>
    tpu.vector_store %arg20[%c0_49, %c0_50, %c16], %114 {strides = array<i32>} : memref<2x8x32xf32, #tpu.memory_space<vmem>>, vector<2x8x8xf32>,
    %116 = vector.extract_strided_slice %51 {offsets = [0, 0, 24], sizes = [2, 8, 8], strides = [1, 1, 1]} : vector<2x8x32xf32> to vector<2x8x8xf32>
    %117 = vector.extract_strided_slice %52 {offsets = [0, 0, 24], sizes = [2, 8, 8], strides = [1, 1, 1]} : vector<2x8x32xf32> to vector<2x8x8xf32>
    "tpu.trace_start"() <{level = 10 : i32, message = "btd,bsd->bts"}> : () -> ()
    %cst_51 = arith.constant dense<0.000000e+00> : vector<2x8x8xf32>
    %118 = tpu.matmul %116, %116, %cst_51 {dimension_numbers = #tpu.dot_dimension_numbers<[2], [2], [1], [1], [0, 0, 0, 1, 1, 1], [0], [0]>} : vector<2x8x8xf32>, vector<2x8x8xf32>, vector<2x8x8xf32> -> vector<2x8x8xf32>
    "tpu.trace_stop"() : () -> ()
    %cst_52 = arith.constant 0.176776692 : f32
    %119 = vector.broadcast %cst_52 : f32 to vector<2x8x8xf32>
    %120 = arith.mulf %118, %119 : vector<2x8x8xf32>
    %cst_53 = arith.constant -1.000000e+30 : f32
    %121 = vector.shape_cast %17 : vector<1x8x8xi1> to vector<1x8x8xi1>
    %122 = vector.broadcast %121 : vector<1x8x8xi1> to vector<2x8x8xi1>
    %123 = vector.broadcast %cst_53 : f32 to vector<2x8x8xf32>
    %124 = arith.select %122, %120, %123 : vector<2x8x8xi1>, vector<2x8x8xf32>
    %cst_54 = arith.constant dense<0xFF800000> : vector<2x8xf32>
    %125 = vector.multi_reduction <maximumf>, %124, %cst_54 [1] : vector<2x8x8xf32> to vector<2x8xf32>
    %126 = vector.shape_cast %125 : vector<2x8xf32> to vector<2x1x8xf32>
    %127 = vector.broadcast %126 : vector<2x1x8xf32> to vector<2x8x8xf32>
    %128 = arith.subf %124, %127 : vector<2x8x8xf32>
    %129 = math.exp %128 : vector<2x8x8xf32>
    %cst_55 = arith.constant dense<0.000000e+00> : vector<2x8xf32>
    %130 = vector.multi_reduction <add>, %129, %cst_55 [1] : vector<2x8x8xf32> to vector<2x8xf32>
    %131 = vector.shape_cast %130 : vector<2x8xf32> to vector<2x1x8xf32>
    %132 = tpu.reciprocal %131 {approx = true} : vector<2x1x8xf32> -> vector<2x1x8xf32>
    %133 = vector.broadcast %132 : vector<2x1x8xf32> to vector<2x8x8xf32>
    %134 = arith.mulf %129, %133 : vector<2x8x8xf32>
    "tpu.trace_start"() <{level = 10 : i32, message = "bts,bsd->btd"}> : () -> ()
    %cst_56 = arith.constant dense<0.000000e+00> : vector<2x8x8xf32>
    %135 = tpu.matmul %134, %117, %cst_56 {dimension_numbers = #tpu.dot_dimension_numbers<[2], [1], [1], [2], [0, 0, 0, 1, 1, 2], [0], [0]>} : vector<2x8x8xf32>, vector<2x8x8xf32>, vector<2x8x8xf32> -> vector<2x8x8xf32>
    "tpu.trace_stop"() : () -> ()
    %c0_57 = arith.constant 0 : index
    %c0_58 = arith.constant 0 : index
    %c24 = arith.constant 24 : index
    %136 = vector.load %arg20[%c0_57, %c0_58, %c24] : memref<2x8x32xf32, #tpu.memory_space<vmem>>, vector<2x8x8xf32>
    tpu.vector_store %arg20[%c0_57, %c0_58, %c24], %135 {strides = array<i32>} : memref<2x8x32xf32, #tpu.memory_space<vmem>>, vector<2x8x8xf32>,
    %c0_59 = arith.constant 0 : index
    %c0_60 = arith.constant 0 : index
    %c0_61 = arith.constant 0 : index
    %137 = vector.load %arg20[%c0_59, %c0_60, %c0_61] : memref<2x8x32xf32, #tpu.memory_space<vmem>>, vector<2x8x32xf32>
    %138 = vector.shape_cast %137 : vector<2x8x32xf32> to vector<16x32xf32>
    %139 = arith.truncf %138 : vector<16x32xf32> to vector<16x32xbf16>
    %c0_62 = arith.constant 0 : index
    %c0_63 = arith.constant 0 : index
    %c0_64 = arith.constant 0 : index
    %140 = vector.load %arg7[%c0_62, %c0_63, %c0_64] : memref<2x32x32xbf16, #tpu.memory_space<vmem>>, vector<1x32x32xbf16>
    %141 = vector.shape_cast %140 : vector<1x32x32xbf16> to vector<32x32xbf16>
    %cst_65 = arith.constant dense<0.000000e+00> : vector<16x32xf32>
    %142 = tpu.matmul %139, %141, %cst_65 {dimension_numbers = #tpu.dot_dimension_numbers<[1], [0], [0], [1], [0, 0, 1, 1], [], []>} : vector<16x32xbf16>, vector<32x32xbf16>, vector<16x32xf32> -> vector<16x32xf32>
    %143 = arith.addf %14, %142 : vector<16x32xf32>
    %c0_66 = arith.constant 0 : index
    %c0_67 = arith.constant 0 : index
    %c0_68 = arith.constant 0 : index
    %144 = vector.load %arg8[%c0_66, %c0_67, %c0_68] : memref<2x1x32xf32, #tpu.memory_space<vmem>>, vector<1x1x32xf32>
    %145 = vector.shape_cast %144 : vector<1x1x32xf32> to vector<1x32xf32>
    %146 = vector.broadcast %145 : vector<1x32xf32> to vector<16x32xf32>
    %147 = arith.addf %143, %146 : vector<16x32xf32>
    %c0_69 = arith.constant 0 : index
    %c0_70 = arith.constant 0 : index
    %c0_71 = arith.constant 0 : index
    %148 = vector.load %arg9[%c0_69, %c0_70, %c0_71] : memref<2x1x32xf32, #tpu.memory_space<vmem>>, vector<1x1x32xf32>
    %149 = vector.shape_cast %148 : vector<1x1x32xf32> to vector<1x32xf32>
    %c0_72 = arith.constant 0 : index
    %c0_73 = arith.constant 0 : index
    %c0_74 = arith.constant 0 : index
    %150 = vector.load %arg10[%c0_72, %c0_73, %c0_74] : memref<2x1x32xf32, #tpu.memory_space<vmem>>, vector<1x1x32xf32>
    %151 = vector.shape_cast %150 : vector<1x1x32xf32> to vector<1x32xf32>
    %cst_75 = arith.constant dense<0.000000e+00> : vector<16xf32>
    %152 = vector.multi_reduction <add>, %147, %cst_75 [1] : vector<16x32xf32> to vector<16xf32>
    %153 = vector.shape_cast %152 : vector<16xf32> to vector<16x1xf32>
    %cst_76 = arith.constant 3.200000e+01 : f32
    %154 = vector.broadcast %cst_76 : f32 to vector<16x1xf32>
    %155 = arith.divf %153, %154 : vector<16x1xf32>
    %156 = vector.broadcast %155 : vector<16x1xf32> to vector<16x32xf32>
    %157 = arith.subf %147, %156 : vector<16x32xf32>
    %158 = arith.mulf %157, %157 : vector<16x32xf32>
    %cst_77 = arith.constant dense<0.000000e+00> : vector<16xf32>
    %159 = vector.multi_reduction <add>, %158, %cst_77 [1] : vector<16x32xf32> to vector<16xf32>
    %160 = vector.shape_cast %159 : vector<16xf32> to vector<16x1xf32>
    %cst_78 = arith.constant 3.200000e+01 : f32
    %161 = vector.broadcast %cst_78 : f32 to vector<16x1xf32>
    %162 = arith.divf %160, %161 : vector<16x1xf32>
    %163 = vector.broadcast %155 : vector<16x1xf32> to vector<16x32xf32>
    %164 = arith.subf %147, %163 : vector<16x32xf32>
    %cst_79 = arith.constant 9.99999974E-6 : f32
    %165 = vector.broadcast %cst_79 : f32 to vector<16x1xf32>
    %166 = arith.addf %162, %165 : vector<16x1xf32>
    %167 = math.rsqrt %166 : vector<16x1xf32>
    %168 = vector.broadcast %167 : vector<16x1xf32> to vector<16x32xf32>
    %169 = arith.mulf %164, %168 : vector<16x32xf32>
    %170 = vector.broadcast %149 : vector<1x32xf32> to vector<16x32xf32>
    %171 = arith.mulf %169, %170 : vector<16x32xf32>
    %172 = vector.broadcast %151 : vector<1x32xf32> to vector<16x32xf32>
    %173 = arith.addf %171, %172 : vector<16x32xf32>
    %174 = arith.truncf %173 : vector<16x32xf32> to vector<16x32xbf16>
    %c0_80 = arith.constant 0 : index
    %c0_81 = arith.constant 0 : index
    %c0_82 = arith.constant 0 : index
    %175 = vector.load %arg11[%c0_80, %c0_81, %c0_82] : memref<2x32x128xbf16, #tpu.memory_space<vmem>>, vector<1x32x128xbf16>
    %176 = vector.shape_cast %175 : vector<1x32x128xbf16> to vector<32x128xbf16>
    %cst_83 = arith.constant dense<0.000000e+00> : vector<16x128xf32>
    %177 = tpu.matmul %174, %176, %cst_83 {dimension_numbers = #tpu.dot_dimension_numbers<[1], [0], [0], [1], [0, 0, 1, 1], [], []>} : vector<16x32xbf16>, vector<32x128xbf16>, vector<16x128xf32> -> vector<16x128xf32>
    %c0_84 = arith.constant 0 : index
    %c0_85 = arith.constant 0 : index
    %c0_86 = arith.constant 0 : index
    %178 = vector.load %arg12[%c0_84, %c0_85, %c0_86] : memref<2x1x128xf32, #tpu.memory_space<vmem>>, vector<1x1x128xf32>
    %179 = vector.shape_cast %178 : vector<1x1x128xf32> to vector<1x128xf32>
    %180 = vector.broadcast %179 : vector<1x128xf32> to vector<16x128xf32>
    %181 = arith.addf %177, %180 : vector<16x128xf32>
    %cst_87 = arith.constant 0.000000e+00 : f32
    %182 = vector.broadcast %cst_87 : f32 to vector<16x128xf32>
    %183 = arith.maximumf %181, %182 : vector<16x128xf32>
    %184 = arith.truncf %183 : vector<16x128xf32> to vector<16x128xbf16>
    %c0_88 = arith.constant 0 : index
    %c0_89 = arith.constant 0 : index
    %c0_90 = arith.constant 0 : index
    %185 = vector.load %arg13[%c0_88, %c0_89, %c0_90] : memref<2x128x32xbf16, #tpu.memory_space<vmem>>, vector<1x128x32xbf16>
    %186 = vector.shape_cast %185 : vector<1x128x32xbf16> to vector<128x32xbf16>
    %cst_91 = arith.constant dense<0.000000e+00> : vector<16x32xf32>
    %187 = tpu.matmul %184, %186, %cst_91 {dimension_numbers = #tpu.dot_dimension_numbers<[1], [0], [0], [1], [0, 0, 1, 1], [], []>} : vector<16x128xbf16>, vector<128x32xbf16>, vector<16x32xf32> -> vector<16x32xf32>
    %188 = arith.addf %147, %187 : vector<16x32xf32>
    %c0_92 = arith.constant 0 : index
    %c0_93 = arith.constant 0 : index
    %c0_94 = arith.constant 0 : index
    %189 = vector.load %arg14[%c0_92, %c0_93, %c0_94] : memref<2x1x32xf32, #tpu.memory_space<vmem>>, vector<1x1x32xf32>
    %190 = vector.shape_cast %189 : vector<1x1x32xf32> to vector<1x32xf32>
    %191 = vector.broadcast %190 : vector<1x32xf32> to vector<16x32xf32>
    %192 = arith.addf %188, %191 : vector<16x32xf32>
    %c1 = arith.constant 1 : index
    %c0_95 = arith.constant 0 : index
    %c0_96 = arith.constant 0 : index
    %193 = vector.load %arg3[%c1, %c0_95, %c0_96] : memref<2x1x32xf32, #tpu.memory_space<vmem>>, vector<1x1x32xf32>
    %194 = vector.shape_cast %193 : vector<1x1x32xf32> to vector<1x32xf32>
    %c1_97 = arith.constant 1 : index
    %c0_98 = arith.constant 0 : index
    %c0_99 = arith.constant 0 : index
    %195 = vector.load %arg4[%c1_97, %c0_98, %c0_99] : memref<2x1x32xf32, #tpu.memory_space<vmem>>, vector<1x1x32xf32>
    %196 = vector.shape_cast %195 : vector<1x1x32xf32> to vector<1x32xf32>
    %cst_100 = arith.constant dense<0.000000e+00> : vector<16xf32>
    %197 = vector.multi_reduction <add>, %192, %cst_100 [1] : vector<16x32xf32> to vector<16xf32>
    %198 = vector.shape_cast %197 : vector<16xf32> to vector<16x1xf32>
    %cst_101 = arith.constant 3.200000e+01 : f32
    %199 = vector.broadcast %cst_101 : f32 to vector<16x1xf32>
    %200 = arith.divf %198, %199 : vector<16x1xf32>
    %201 = vector.broadcast %200 : vector<16x1xf32> to vector<16x32xf32>
    %202 = arith.subf %192, %201 : vector<16x32xf32>
    %203 = arith.mulf %202, %202 : vector<16x32xf32>
    %cst_102 = arith.constant dense<0.000000e+00> : vector<16xf32>
    %204 = vector.multi_reduction <add>, %203, %cst_102 [1] : vector<16x32xf32> to vector<16xf32>
    %205 = vector.shape_cast %204 : vector<16xf32> to vector<16x1xf32>
    %cst_103 = arith.constant 3.200000e+01 : f32
    %206 = vector.broadcast %cst_103 : f32 to vector<16x1xf32>
    %207 = arith.divf %205, %206 : vector<16x1xf32>
    %208 = vector.broadcast %200 : vector<16x1xf32> to vector<16x32xf32>
    %209 = arith.subf %192, %208 : vector<16x32xf32>
    %cst_104 = arith.constant 9.99999974E-6 : f32
    %210 = vector.broadcast %cst_104 : f32 to vector<16x1xf32>
    %211 = arith.addf %207, %210 : vector<16x1xf32>
    %212 = math.rsqrt %211 : vector<16x1xf32>
    %213 = vector.broadcast %212 : vector<16x1xf32> to vector<16x32xf32>
    %214 = arith.mulf %209, %213 : vector<16x32xf32>
    %215 = vector.broadcast %194 : vector<1x32xf32> to vector<16x32xf32>
    %216 = arith.mulf %214, %215 : vector<16x32xf32>
    %217 = vector.broadcast %196 : vector<1x32xf32> to vector<16x32xf32>
    %218 = arith.addf %216, %217 : vector<16x32xf32>
    %219 = arith.truncf %218 : vector<16x32xf32> to vector<16x32xbf16>
    %c1_105 = arith.constant 1 : index
    %c0_106 = arith.constant 0 : index
    %c0_107 = arith.constant 0 : index
    %220 = vector.load %arg5[%c1_105, %c0_106, %c0_107] : memref<2x32x32xbf16, #tpu.memory_space<vmem>>, vector<1x32x32xbf16>
    %221 = vector.shape_cast %220 : vector<1x32x32xbf16> to vector<32x32xbf16>
    %cst_108 = arith.constant dense<0.000000e+00> : vector<16x32xf32>
    %222 = tpu.matmul %219, %221, %cst_108 {dimension_numbers = #tpu.dot_dimension_numbers<[1], [0], [0], [1], [0, 0, 1, 1], [], []>} : vector<16x32xbf16>, vector<32x32xbf16>, vector<16x32xf32> -> vector<16x32xf32>
    %c1_109 = arith.constant 1 : index
    %c0_110 = arith.constant 0 : index
    %c0_111 = arith.constant 0 : index
    %223 = vector.load %arg6[%c1_109, %c0_110, %c0_111] : memref<2x32x32xbf16, #tpu.memory_space<vmem>>, vector<1x32x32xbf16>
    %224 = vector.shape_cast %223 : vector<1x32x32xbf16> to vector<32x32xbf16>
    %cst_112 = arith.constant dense<0.000000e+00> : vector<16x32xf32>
    %225 = tpu.matmul %219, %224, %cst_112 {dimension_numbers = #tpu.dot_dimension_numbers<[1], [0], [0], [1], [0, 0, 1, 1], [], []>} : vector<16x32xbf16>, vector<32x32xbf16>, vector<16x32xf32> -> vector<16x32xf32>
    %226 = vector.shape_cast %222 : vector<16x32xf32> to vector<2x8x32xf32>
    %227 = vector.shape_cast %225 : vector<16x32xf32> to vector<2x8x32xf32>
    %228 = vector.extract_strided_slice %226 {offsets = [0, 0, 0], sizes = [2, 8, 8], strides = [1, 1, 1]} : vector<2x8x32xf32> to vector<2x8x8xf32>
    %229 = vector.extract_strided_slice %227 {offsets = [0, 0, 0], sizes = [2, 8, 8], strides = [1, 1, 1]} : vector<2x8x32xf32> to vector<2x8x8xf32>
    "tpu.trace_start"() <{level = 10 : i32, message = "btd,bsd->bts"}> : () -> ()
    %cst_113 = arith.constant dense<0.000000e+00> : vector<2x8x8xf32>
    %230 = tpu.matmul %228, %228, %cst_113 {dimension_numbers = #tpu.dot_dimension_numbers<[2], [2], [1], [1], [0, 0, 0, 1, 1, 1], [0], [0]>} : vector<2x8x8xf32>, vector<2x8x8xf32>, vector<2x8x8xf32> -> vector<2x8x8xf32>
    "tpu.trace_stop"() : () -> ()
    %cst_114 = arith.constant 0.176776692 : f32
    %231 = vector.broadcast %cst_114 : f32 to vector<2x8x8xf32>
    %232 = arith.mulf %230, %231 : vector<2x8x8xf32>
    %cst_115 = arith.constant -1.000000e+30 : f32
    %233 = vector.shape_cast %17 : vector<1x8x8xi1> to vector<1x8x8xi1>
    %234 = vector.broadcast %233 : vector<1x8x8xi1> to vector<2x8x8xi1>
    %235 = vector.broadcast %cst_115 : f32 to vector<2x8x8xf32>
    %236 = arith.select %234, %232, %235 : vector<2x8x8xi1>, vector<2x8x8xf32>
    %cst_116 = arith.constant dense<0xFF800000> : vector<2x8xf32>
    %237 = vector.multi_reduction <maximumf>, %236, %cst_116 [1] : vector<2x8x8xf32> to vector<2x8xf32>
    %238 = vector.shape_cast %237 : vector<2x8xf32> to vector<2x1x8xf32>
    %239 = vector.broadcast %238 : vector<2x1x8xf32> to vector<2x8x8xf32>
    %240 = arith.subf %236, %239 : vector<2x8x8xf32>
    %241 = math.exp %240 : vector<2x8x8xf32>
    %cst_117 = arith.constant dense<0.000000e+00> : vector<2x8xf32>
    %242 = vector.multi_reduction <add>, %241, %cst_117 [1] : vector<2x8x8xf32> to vector<2x8xf32>
    %243 = vector.shape_cast %242 : vector<2x8xf32> to vector<2x1x8xf32>
    %244 = tpu.reciprocal %243 {approx = true} : vector<2x1x8xf32> -> vector<2x1x8xf32>
    %245 = vector.broadcast %244 : vector<2x1x8xf32> to vector<2x8x8xf32>
    %246 = arith.mulf %241, %245 : vector<2x8x8xf32>
    "tpu.trace_start"() <{level = 10 : i32, message = "bts,bsd->btd"}> : () -> ()
    %cst_118 = arith.constant dense<0.000000e+00> : vector<2x8x8xf32>
    %247 = tpu.matmul %246, %229, %cst_118 {dimension_numbers = #tpu.dot_dimension_numbers<[2], [1], [1], [2], [0, 0, 0, 1, 1, 2], [0], [0]>} : vector<2x8x8xf32>, vector<2x8x8xf32>, vector<2x8x8xf32> -> vector<2x8x8xf32>
    "tpu.trace_stop"() : () -> ()
    %c0_119 = arith.constant 0 : index
    %c0_120 = arith.constant 0 : index
    %c0_121 = arith.constant 0 : index
    %248 = vector.load %arg20[%c0_119, %c0_120, %c0_121] : memref<2x8x32xf32, #tpu.memory_space<vmem>>, vector<2x8x8xf32>
    tpu.vector_store %arg20[%c0_119, %c0_120, %c0_121], %247 {strides = array<i32>} : memref<2x8x32xf32, #tpu.memory_space<vmem>>, vector<2x8x8xf32>,
    %249 = vector.extract_strided_slice %226 {offsets = [0, 0, 8], sizes = [2, 8, 8], strides = [1, 1, 1]} : vector<2x8x32xf32> to vector<2x8x8xf32>
    %250 = vector.extract_strided_slice %227 {offsets = [0, 0, 8], sizes = [2, 8, 8], strides = [1, 1, 1]} : vector<2x8x32xf32> to vector<2x8x8xf32>
    "tpu.trace_start"() <{level = 10 : i32, message = "btd,bsd->bts"}> : () -> ()
    %cst_122 = arith.constant dense<0.000000e+00> : vector<2x8x8xf32>
    %251 = tpu.matmul %249, %249, %cst_122 {dimension_numbers = #tpu.dot_dimension_numbers<[2], [2], [1], [1], [0, 0, 0, 1, 1, 1], [0], [0]>} : vector<2x8x8xf32>, vector<2x8x8xf32>, vector<2x8x8xf32> -> vector<2x8x8xf32>
    "tpu.trace_stop"() : () -> ()
    %cst_123 = arith.constant 0.176776692 : f32
    %252 = vector.broadcast %cst_123 : f32 to vector<2x8x8xf32>
    %253 = arith.mulf %251, %252 : vector<2x8x8xf32>
    %cst_124 = arith.constant -1.000000e+30 : f32
    %254 = vector.shape_cast %17 : vector<1x8x8xi1> to vector<1x8x8xi1>
    %255 = vector.broadcast %254 : vector<1x8x8xi1> to vector<2x8x8xi1>
    %256 = vector.broadcast %cst_124 : f32 to vector<2x8x8xf32>
    %257 = arith.select %255, %253, %256 : vector<2x8x8xi1>, vector<2x8x8xf32>
    %cst_125 = arith.constant dense<0xFF800000> : vector<2x8xf32>
    %258 = vector.multi_reduction <maximumf>, %257, %cst_125 [1] : vector<2x8x8xf32> to vector<2x8xf32>
    %259 = vector.shape_cast %258 : vector<2x8xf32> to vector<2x1x8xf32>
    %260 = vector.broadcast %259 : vector<2x1x8xf32> to vector<2x8x8xf32>
    %261 = arith.subf %257, %260 : vector<2x8x8xf32>
    %262 = math.exp %261 : vector<2x8x8xf32>
    %cst_126 = arith.constant dense<0.000000e+00> : vector<2x8xf32>
    %263 = vector.multi_reduction <add>, %262, %cst_126 [1] : vector<2x8x8xf32> to vector<2x8xf32>
    %264 = vector.shape_cast %263 : vector<2x8xf32> to vector<2x1x8xf32>
    %265 = tpu.reciprocal %264 {approx = true} : vector<2x1x8xf32> -> vector<2x1x8xf32>
    %266 = vector.broadcast %265 : vector<2x1x8xf32> to vector<2x8x8xf32>
    %267 = arith.mulf %262, %266 : vector<2x8x8xf32>
    "tpu.trace_start"() <{level = 10 : i32, message = "bts,bsd->btd"}> : () -> ()
    %cst_127 = arith.constant dense<0.000000e+00> : vector<2x8x8xf32>
    %268 = tpu.matmul %267, %250, %cst_127 {dimension_numbers = #tpu.dot_dimension_numbers<[2], [1], [1], [2], [0, 0, 0, 1, 1, 2], [0], [0]>} : vector<2x8x8xf32>, vector<2x8x8xf32>, vector<2x8x8xf32> -> vector<2x8x8xf32>
    "tpu.trace_stop"() : () -> ()
    %c0_128 = arith.constant 0 : index
    %c0_129 = arith.constant 0 : index
    %c8_130 = arith.constant 8 : index
    %269 = vector.load %arg20[%c0_128, %c0_129, %c8_130] : memref<2x8x32xf32, #tpu.memory_space<vmem>>, vector<2x8x8xf32>
    tpu.vector_store %arg20[%c0_128, %c0_129, %c8_130], %268 {strides = array<i32>} : memref<2x8x32xf32, #tpu.memory_space<vmem>>, vector<2x8x8xf32>,
    %270 = vector.extract_strided_slice %226 {offsets = [0, 0, 16], sizes = [2, 8, 8], strides = [1, 1, 1]} : vector<2x8x32xf32> to vector<2x8x8xf32>
    %271 = vector.extract_strided_slice %227 {offsets = [0, 0, 16], sizes = [2, 8, 8], strides = [1, 1, 1]} : vector<2x8x32xf32> to vector<2x8x8xf32>
    "tpu.trace_start"() <{level = 10 : i32, message = "btd,bsd->bts"}> : () -> ()
    %cst_131 = arith.constant dense<0.000000e+00> : vector<2x8x8xf32>
    %272 = tpu.matmul %270, %270, %cst_131 {dimension_numbers = #tpu.dot_dimension_numbers<[2], [2], [1], [1], [0, 0, 0, 1, 1, 1], [0], [0]>} : vector<2x8x8xf32>, vector<2x8x8xf32>, vector<2x8x8xf32> -> vector<2x8x8xf32>
    "tpu.trace_stop"() : () -> ()
    %cst_132 = arith.constant 0.176776692 : f32
    %273 = vector.broadcast %cst_132 : f32 to vector<2x8x8xf32>
    %274 = arith.mulf %272, %273 : vector<2x8x8xf32>
    %cst_133 = arith.constant -1.000000e+30 : f32
    %275 = vector.shape_cast %17 : vector<1x8x8xi1> to vector<1x8x8xi1>
    %276 = vector.broadcast %275 : vector<1x8x8xi1> to vector<2x8x8xi1>
    %277 = vector.broadcast %cst_133 : f32 to vector<2x8x8xf32>
    %278 = arith.select %276, %274, %277 : vector<2x8x8xi1>, vector<2x8x8xf32>
    %cst_134 = arith.constant dense<0xFF800000> : vector<2x8xf32>
    %279 = vector.multi_reduction <maximumf>, %278, %cst_134 [1] : vector<2x8x8xf32> to vector<2x8xf32>
    %280 = vector.shape_cast %279 : vector<2x8xf32> to vector<2x1x8xf32>
    %281 = vector.broadcast %280 : vector<2x1x8xf32> to vector<2x8x8xf32>
    %282 = arith.subf %278, %281 : vector<2x8x8xf32>
    %283 = math.exp %282 : vector<2x8x8xf32>
    %cst_135 = arith.constant dense<0.000000e+00> : vector<2x8xf32>
    %284 = vector.multi_reduction <add>, %283, %cst_135 [1] : vector<2x8x8xf32> to vector<2x8xf32>
    %285 = vector.shape_cast %284 : vector<2x8xf32> to vector<2x1x8xf32>
    %286 = tpu.reciprocal %285 {approx = true} : vector<2x1x8xf32> -> vector<2x1x8xf32>
    %287 = vector.broadcast %286 : vector<2x1x8xf32> to vector<2x8x8xf32>
    %288 = arith.mulf %283, %287 : vector<2x8x8xf32>
    "tpu.trace_start"() <{level = 10 : i32, message = "bts,bsd->btd"}> : () -> ()
    %cst_136 = arith.constant dense<0.000000e+00> : vector<2x8x8xf32>
    %289 = tpu.matmul %288, %271, %cst_136 {dimension_numbers = #tpu.dot_dimension_numbers<[2], [1], [1], [2], [0, 0, 0, 1, 1, 2], [0], [0]>} : vector<2x8x8xf32>, vector<2x8x8xf32>, vector<2x8x8xf32> -> vector<2x8x8xf32>
    "tpu.trace_stop"() : () -> ()
    %c0_137 = arith.constant 0 : index
    %c0_138 = arith.constant 0 : index
    %c16_139 = arith.constant 16 : index
    %290 = vector.load %arg20[%c0_137, %c0_138, %c16_139] : memref<2x8x32xf32, #tpu.memory_space<vmem>>, vector<2x8x8xf32>
    tpu.vector_store %arg20[%c0_137, %c0_138, %c16_139], %289 {strides = array<i32>} : memref<2x8x32xf32, #tpu.memory_space<vmem>>, vector<2x8x8xf32>,
    %291 = vector.extract_strided_slice %226 {offsets = [0, 0, 24], sizes = [2, 8, 8], strides = [1, 1, 1]} : vector<2x8x32xf32> to vector<2x8x8xf32>
    %292 = vector.extract_strided_slice %227 {offsets = [0, 0, 24], sizes = [2, 8, 8], strides = [1, 1, 1]} : vector<2x8x32xf32> to vector<2x8x8xf32>
    "tpu.trace_start"() <{level = 10 : i32, message = "btd,bsd->bts"}> : () -> ()
    %cst_140 = arith.constant dense<0.000000e+00> : vector<2x8x8xf32>
    %293 = tpu.matmul %291, %291, %cst_140 {dimension_numbers = #tpu.dot_dimension_numbers<[2], [2], [1], [1], [0, 0, 0, 1, 1, 1], [0], [0]>} : vector<2x8x8xf32>, vector<2x8x8xf32>, vector<2x8x8xf32> -> vector<2x8x8xf32>
    "tpu.trace_stop"() : () -> ()
    %cst_141 = arith.constant 0.176776692 : f32
    %294 = vector.broadcast %cst_141 : f32 to vector<2x8x8xf32>
    %295 = arith.mulf %293, %294 : vector<2x8x8xf32>
    %cst_142 = arith.constant -1.000000e+30 : f32
    %296 = vector.shape_cast %17 : vector<1x8x8xi1> to vector<1x8x8xi1>
    %297 = vector.broadcast %296 : vector<1x8x8xi1> to vector<2x8x8xi1>
    %298 = vector.broadcast %cst_142 : f32 to vector<2x8x8xf32>
    %299 = arith.select %297, %295, %298 : vector<2x8x8xi1>, vector<2x8x8xf32>
    %cst_143 = arith.constant dense<0xFF800000> : vector<2x8xf32>
    %300 = vector.multi_reduction <maximumf>, %299, %cst_143 [1] : vector<2x8x8xf32> to vector<2x8xf32>
    %301 = vector.shape_cast %300 : vector<2x8xf32> to vector<2x1x8xf32>
    %302 = vector.broadcast %301 : vector<2x1x8xf32> to vector<2x8x8xf32>
    %303 = arith.subf %299, %302 : vector<2x8x8xf32>
    %304 = math.exp %303 : vector<2x8x8xf32>
    %cst_144 = arith.constant dense<0.000000e+00> : vector<2x8xf32>
    %305 = vector.multi_reduction <add>, %304, %cst_144 [1] : vector<2x8x8xf32> to vector<2x8xf32>
    %306 = vector.shape_cast %305 : vector<2x8xf32> to vector<2x1x8xf32>
    %307 = tpu.reciprocal %306 {approx = true} : vector<2x1x8xf32> -> vector<2x1x8xf32>
    %308 = vector.broadcast %307 : vector<2x1x8xf32> to vector<2x8x8xf32>
    %309 = arith.mulf %304, %308 : vector<2x8x8xf32>
    "tpu.trace_start"() <{level = 10 : i32, message = "bts,bsd->btd"}> : () -> ()
    %cst_145 = arith.constant dense<0.000000e+00> : vector<2x8x8xf32>
    %310 = tpu.matmul %309, %292, %cst_145 {dimension_numbers = #tpu.dot_dimension_numbers<[2], [1], [1], [2], [0, 0, 0, 1, 1, 2], [0], [0]>} : vector<2x8x8xf32>, vector<2x8x8xf32>, vector<2x8x8xf32> -> vector<2x8x8xf32>
    "tpu.trace_stop"() : () -> ()
    %c0_146 = arith.constant 0 : index
    %c0_147 = arith.constant 0 : index
    %c24_148 = arith.constant 24 : index
    %311 = vector.load %arg20[%c0_146, %c0_147, %c24_148] : memref<2x8x32xf32, #tpu.memory_space<vmem>>, vector<2x8x8xf32>
    tpu.vector_store %arg20[%c0_146, %c0_147, %c24_148], %310 {strides = array<i32>} : memref<2x8x32xf32, #tpu.memory_space<vmem>>, vector<2x8x8xf32>,
    %c0_149 = arith.constant 0 : index
    %c0_150 = arith.constant 0 : index
    %c0_151 = arith.constant 0 : index
    %312 = vector.load %arg20[%c0_149, %c0_150, %c0_151] : memref<2x8x32xf32, #tpu.memory_space<vmem>>, vector<2x8x32xf32>
    %313 = vector.shape_cast %312 : vector<2x8x32xf32> to vector<16x32xf32>
    %314 = arith.truncf %313 : vector<16x32xf32> to vector<16x32xbf16>
    %c1_152 = arith.constant 1 : index
    %c0_153 = arith.constant 0 : index
    %c0_154 = arith.constant 0 : index
    %315 = vector.load %arg7[%c1_152, %c0_153, %c0_154] : memref<2x32x32xbf16, #tpu.memory_space<vmem>>, vector<1x32x32xbf16>
    %316 = vector.shape_cast %315 : vector<1x32x32xbf16> to vector<32x32xbf16>
    %cst_155 = arith.constant dense<0.000000e+00> : vector<16x32xf32>
    %317 = tpu.matmul %314, %316, %cst_155 {dimension_numbers = #tpu.dot_dimension_numbers<[1], [0], [0], [1], [0, 0, 1, 1], [], []>} : vector<16x32xbf16>, vector<32x32xbf16>, vector<16x32xf32> -> vector<16x32xf32>
    %318 = arith.addf %192, %317 : vector<16x32xf32>
    %c1_156 = arith.constant 1 : index
    %c0_157 = arith.constant 0 : index
    %c0_158 = arith.constant 0 : index
    %319 = vector.load %arg8[%c1_156, %c0_157, %c0_158] : memref<2x1x32xf32, #tpu.memory_space<vmem>>, vector<1x1x32xf32>
    %320 = vector.shape_cast %319 : vector<1x1x32xf32> to vector<1x32xf32>
    %321 = vector.broadcast %320 : vector<1x32xf32> to vector<16x32xf32>
    %322 = arith.addf %318, %321 : vector<16x32xf32>
    %c1_159 = arith.constant 1 : index
    %c0_160 = arith.constant 0 : index
    %c0_161 = arith.constant 0 : index
    %323 = vector.load %arg9[%c1_159, %c0_160, %c0_161] : memref<2x1x32xf32, #tpu.memory_space<vmem>>, vector<1x1x32xf32>
    %324 = vector.shape_cast %323 : vector<1x1x32xf32> to vector<1x32xf32>
    %c1_162 = arith.constant 1 : index
    %c0_163 = arith.constant 0 : index
    %c0_164 = arith.constant 0 : index
    %325 = vector.load %arg10[%c1_162, %c0_163, %c0_164] : memref<2x1x32xf32, #tpu.memory_space<vmem>>, vector<1x1x32xf32>
    %326 = vector.shape_cast %325 : vector<1x1x32xf32> to vector<1x32xf32>
    %cst_165 = arith.constant dense<0.000000e+00> : vector<16xf32>
    %327 = vector.multi_reduction <add>, %322, %cst_165 [1] : vector<16x32xf32> to vector<16xf32>
    %328 = vector.shape_cast %327 : vector<16xf32> to vector<16x1xf32>
    %cst_166 = arith.constant 3.200000e+01 : f32
    %329 = vector.broadcast %cst_166 : f32 to vector<16x1xf32>
    %330 = arith.divf %328, %329 : vector<16x1xf32>
    %331 = vector.broadcast %330 : vector<16x1xf32> to vector<16x32xf32>
    %332 = arith.subf %322, %331 : vector<16x32xf32>
    %333 = arith.mulf %332, %332 : vector<16x32xf32>
    %cst_167 = arith.constant dense<0.000000e+00> : vector<16xf32>
    %334 = vector.multi_reduction <add>, %333, %cst_167 [1] : vector<16x32xf32> to vector<16xf32>
    %335 = vector.shape_cast %334 : vector<16xf32> to vector<16x1xf32>
    %cst_168 = arith.constant 3.200000e+01 : f32
    %336 = vector.broadcast %cst_168 : f32 to vector<16x1xf32>
    %337 = arith.divf %335, %336 : vector<16x1xf32>
    %338 = vector.broadcast %330 : vector<16x1xf32> to vector<16x32xf32>
    %339 = arith.subf %322, %338 : vector<16x32xf32>
    %cst_169 = arith.constant 9.99999974E-6 : f32
    %340 = vector.broadcast %cst_169 : f32 to vector<16x1xf32>
    %341 = arith.addf %337, %340 : vector<16x1xf32>
    %342 = math.rsqrt %341 : vector<16x1xf32>
    %343 = vector.broadcast %342 : vector<16x1xf32> to vector<16x32xf32>
    %344 = arith.mulf %339, %343 : vector<16x32xf32>
    %345 = vector.broadcast %324 : vector<1x32xf32> to vector<16x32xf32>
    %346 = arith.mulf %344, %345 : vector<16x32xf32>
    %347 = vector.broadcast %326 : vector<1x32xf32> to vector<16x32xf32>
    %348 = arith.addf %346, %347 : vector<16x32xf32>
    %349 = arith.truncf %348 : vector<16x32xf32> to vector<16x32xbf16>
    %c1_170 = arith.constant 1 : index
    %c0_171 = arith.constant 0 : index
    %c0_172 = arith.constant 0 : index
    %350 = vector.load %arg11[%c1_170, %c0_171, %c0_172] : memref<2x32x128xbf16, #tpu.memory_space<vmem>>, vector<1x32x128xbf16>
    %351 = vector.shape_cast %350 : vector<1x32x128xbf16> to vector<32x128xbf16>
    %cst_173 = arith.constant dense<0.000000e+00> : vector<16x128xf32>
    %352 = tpu.matmul %349, %351, %cst_173 {dimension_numbers = #tpu.dot_dimension_numbers<[1], [0], [0], [1], [0, 0, 1, 1], [], []>} : vector<16x32xbf16>, vector<32x128xbf16>, vector<16x128xf32> -> vector<16x128xf32>
    %c1_174 = arith.constant 1 : index
    %c0_175 = arith.constant 0 : index
    %c0_176 = arith.constant 0 : index
    %353 = vector.load %arg12[%c1_174, %c0_175, %c0_176] : memref<2x1x128xf32, #tpu.memory_space<vmem>>, vector<1x1x128xf32>
    %354 = vector.shape_cast %353 : vector<1x1x128xf32> to vector<1x128xf32>
    %355 = vector.broadcast %354 : vector<1x128xf32> to vector<16x128xf32>
    %356 = arith.addf %352, %355 : vector<16x128xf32>
    %cst_177 = arith.constant 0.000000e+00 : f32
    %357 = vector.broadcast %cst_177 : f32 to vector<16x128xf32>
    %358 = arith.maximumf %356, %357 : vector<16x128xf32>
    %359 = arith.truncf %358 : vector<16x128xf32> to vector<16x128xbf16>
    %c1_178 = arith.constant 1 : index
    %c0_179 = arith.constant 0 : index
    %c0_180 = arith.constant 0 : index
    %360 = vector.load %arg13[%c1_178, %c0_179, %c0_180] : memref<2x128x32xbf16, #tpu.memory_space<vmem>>, vector<1x128x32xbf16>
    %361 = vector.shape_cast %360 : vector<1x128x32xbf16> to vector<128x32xbf16>
    %cst_181 = arith.constant dense<0.000000e+00> : vector<16x32xf32>
    %362 = tpu.matmul %359, %361, %cst_181 {dimension_numbers = #tpu.dot_dimension_numbers<[1], [0], [0], [1], [0, 0, 1, 1], [], []>} : vector<16x128xbf16>, vector<128x32xbf16>, vector<16x32xf32> -> vector<16x32xf32>
    %363 = arith.addf %322, %362 : vector<16x32xf32>
    %c1_182 = arith.constant 1 : index
    %c0_183 = arith.constant 0 : index
    %c0_184 = arith.constant 0 : index
    %364 = vector.load %arg14[%c1_182, %c0_183, %c0_184] : memref<2x1x32xf32, #tpu.memory_space<vmem>>, vector<1x1x32xf32>
    %365 = vector.shape_cast %364 : vector<1x1x32xf32> to vector<1x32xf32>
    %366 = vector.broadcast %365 : vector<1x32xf32> to vector<16x32xf32>
    %367 = arith.addf %363, %366 : vector<16x32xf32>
    %c0_185 = arith.constant 0 : index
    %c0_186 = arith.constant 0 : index
    %368 = vector.load %arg15[%c0_185, %c0_186] : memref<1x32xf32, #tpu.memory_space<vmem>>, vector<1x32xf32>
    %c0_187 = arith.constant 0 : index
    %c0_188 = arith.constant 0 : index
    %369 = vector.load %arg16[%c0_187, %c0_188] : memref<1x32xf32, #tpu.memory_space<vmem>>, vector<1x32xf32>
    %cst_189 = arith.constant dense<0.000000e+00> : vector<16xf32>
    %370 = vector.multi_reduction <add>, %367, %cst_189 [1] : vector<16x32xf32> to vector<16xf32>
    %371 = vector.shape_cast %370 : vector<16xf32> to vector<16x1xf32>
    %cst_190 = arith.constant 3.200000e+01 : f32
    %372 = vector.broadcast %cst_190 : f32 to vector<16x1xf32>
    %373 = arith.divf %371, %372 : vector<16x1xf32>
    %374 = vector.broadcast %373 : vector<16x1xf32> to vector<16x32xf32>
    %375 = arith.subf %367, %374 : vector<16x32xf32>
    %376 = arith.mulf %375, %375 : vector<16x32xf32>
    %cst_191 = arith.constant dense<0.000000e+00> : vector<16xf32>
    %377 = vector.multi_reduction <add>, %376, %cst_191 [1] : vector<16x32xf32> to vector<16xf32>
    %378 = vector.shape_cast %377 : vector<16xf32> to vector<16x1xf32>
    %cst_192 = arith.constant 3.200000e+01 : f32
    %379 = vector.broadcast %cst_192 : f32 to vector<16x1xf32>
    %380 = arith.divf %378, %379 : vector<16x1xf32>
    %381 = vector.broadcast %373 : vector<16x1xf32> to vector<16x32xf32>
    %382 = arith.subf %367, %381 : vector<16x32xf32>
    %cst_193 = arith.constant 9.99999974E-6 : f32
    %383 = vector.broadcast %cst_193 : f32 to vector<16x1xf32>
    %384 = arith.addf %380, %383 : vector<16x1xf32>
    %385 = math.rsqrt %384 : vector<16x1xf32>
    %386 = vector.broadcast %385 : vector<16x1xf32> to vector<16x32xf32>
    %387 = arith.mulf %382, %386 : vector<16x32xf32>
    %388 = vector.broadcast %368 : vector<1x32xf32> to vector<16x32xf32>
    %389 = arith.mulf %387, %388 : vector<16x32xf32>
    %390 = vector.broadcast %369 : vector<1x32xf32> to vector<16x32xf32>
    %391 = arith.addf %389, %390 : vector<16x32xf32>
    %392 = arith.truncf %391 : vector<16x32xf32> to vector<16x32xbf16>
    %c0_194 = arith.constant 0 : index
    %c0_195 = arith.constant 0 : index
    %393 = vector.load %arg17[%c0_194, %c0_195] : memref<32x128xbf16, #tpu.memory_space<vmem>>, vector<32x128xbf16>
    %cst_196 = arith.constant dense<0.000000e+00> : vector<16x128xf32>
    %394 = tpu.matmul %392, %393, %cst_196 {dimension_numbers = #tpu.dot_dimension_numbers<[1], [0], [0], [1], [0, 0, 1, 1], [], []>} : vector<16x32xbf16>, vector<32x128xbf16>, vector<16x128xf32> -> vector<16x128xf32>
    %c0_197 = arith.constant 0 : index
    %c0_198 = arith.constant 0 : index
    %395 = vector.load %arg18[%c0_197, %c0_198] : memref<1x128xf32, #tpu.memory_space<vmem>>, vector<1x128xf32>
    %396 = vector.broadcast %395 : vector<1x128xf32> to vector<16x128xf32>
    %397 = arith.addf %394, %396 : vector<16x128xf32>
    %c0_199 = arith.constant 0 : index
    %c0_200 = arith.constant 0 : index
    %398 = vector.load %arg19[%c0_199, %c0_200] : memref<16x128xf32, #tpu.memory_space<vmem>>, vector<16x128xf32>
    tpu.vector_store %arg19[%c0_199, %c0_200], %397 {strides = array<i32>} : memref<16x128xf32, #tpu.memory_space<vmem>>, vector<16x128xf32>,
    return
  }
}

</mosaic_0001>

<bundles_post_ra>
// kernel: language_model_forward.1
= control target key start
LH: loop header
LB: loop body
LE: loop exit
PB: predicated region body
PF: predicated region fallthrough
CT: control target
= control target key end

     0   :  { %v4778_v0 = vmov 0   ;;  %v65_v27 = vlaneseq  ;;  %v4779_v30 = vmov 1.0   ;;  %vm176_vm2 = vcmask 261120   ;;  %s4784_s27 = smov 104   ;;  %s4785_s28 = smov 8   ;;  %s5506_s0 = inlined_call_operand.vmem [shape: s32[16,1], index: 0, kind: input, shape index: {}]   ;;  %s5507_s1 = inlined_call_operand.vmem [shape: f32[128,32], index: 1, kind: input, shape index: {}]   ;;  %s5508_s2 = inlined_call_operand.vmem [shape: f32[8,32], index: 2, kind: input, shape index: {}]   ;;  %s5509_s5 = inlined_call_operand.vmem [shape: bf16[2,32,32], index: 5, kind: input, shape index: {}]   ;;  %s5510_s6 = inlined_call_operand.vmem [shape: bf16[2,32,32], index: 6, kind: input, shape index: {}]   ;;  %s5511_s3 = inlined_call_operand.vmem [shape: f32[2,1,32], index: 3, kind: input, shape index: {}]   ;;  %s5512_s4 = inlined_call_operand.vmem [shape: f32[2,1,32], index: 4, kind: input, shape index: {}]   ;;  %s5513_s7 = inlined_call_operand.vmem [shape: bf16[2,32,32], index: 7, kind: input, shape index: {}]   ;;  %s5514_s8 = inlined_call_operand.vmem [shape: f32[2,1,32], index: 8, kind: input, shape index: {}]   ;;  %s5515_s11 = inlined_call_operand.vmem [shape: bf16[2,32,128], index: 11, kind: input, shape index: {}]   ;;  %s5516_s13 = inlined_call_operand.vmem [shape: bf16[2,128,32], index: 13, kind: input, shape index: {}]   ;;  %s5517_s9 = inlined_call_operand.vmem [shape: f32[2,1,32], index: 9, kind: input, shape index: {}]   ;;  %s5518_s10 = inlined_call_operand.vmem [shape: f32[2,1,32], index: 10, kind: input, shape index: {}]   ;;  %s5519_s12 = inlined_call_operand.vmem [shape: f32[2,1,128], index: 12, kind: input, shape index: {}]   ;;  %s5520_s14 = inlined_call_operand.vmem [shape: f32[2,1,32], index: 14, kind: input, shape index: {}]   ;;  %s5521_s17 = inlined_call_operand.vmem [shape: bf16[32,128], index: 17, kind: input, shape index: {}]   ;;  %s5522_s15 = inlined_call_operand.vmem [shape: f32[1,32], index: 15, kind: input, shape index: {}]   ;;  %s5523_s16 = inlined_call_operand.vmem [shape: f32[1,32], index: 16, kind: input, shape index: {}]   ;;  %s5524_s18 = inlined_call_operand.vmem [shape: f32[1,128], index: 18, kind: input, shape index: {}]   ;;  %s5525_s19 = inlined_call_operand.vmem [shape: f32[16,128], index: 19, kind: output, shape index: {}]  }
   0x1   :  { %5529 = sst [smem:[#allocation3_spill]] %s5506_s0  ;;  %4659 = vset.pattern.permute.xlu0 %v4778_v0  ;;  %v4780_v50 = vmov 0.0   ;;  %v4661_v51 = vld [vmem:[%s5510_s6] sm:$0xff]   ;;  %v4663_v53 = vld [vmem:[%s5510_s6 + $0x8] sm:$0xff]   ;;  %vm4781_vm3 = vmmov 0   ;;  %vm338_vm4 = vcmask 64512  }
   0x2   :  { %5530 = sst [smem:[#allocation4_spill]] %s5507_s1  ;;  %s5533_s20 = sld [smem:[#allocation3_spill]]  ;;  %v4943_v28 = vand.u32 127, %v65_v27  ;;  %4353 = vmatprep.subr.bf16.mxu1 %v4780_v50  ;;  %4357 = vmatprep.mubr.msk.bf16.mxu1 %vm4781_vm3, %v4780_v50  ;;  %v4036_v62 = vld [vmem:[%s5511_s3] ss:$0 sm:$0xff]  ;;  %vm1029_vm6 = vcmask 130112  }
   0x3   :  { %5531 = sst [smem:[#allocation5_spill]] %s5508_s2  ;;  %s5534_s22 = sld [smem:[#allocation4_spill]]  ;;  %4354 = vmatpush3.bf16.msra.mxu1 %v4661_v51  ;;  %vm1382_vm7 = vcmask 195712   ;;  %vm1735_vm8 = vcmask 261312  }
   0x4   :  { %5532 = sst [smem:[#allocation6_spill]] %s5509_s5  ;;  %s5535_s26 = sld [smem:[#allocation5_spill]]  ;;  %4355 = vmatprep.subr.bf16.mxu1 %v4780_v50 }
   0x5   :  { %s5536_s29 = sld [smem:[#allocation6_spill]]  ;;  %s4782_s5 = smov 112  }
   0x6   :  { %s4786_s0 = smov 16  }
   0x7   :  { %4356 = vmatpush3.bf16.msra.mxu1 %v4663_v53 }
   0x8   :  { %v63_v1 = vld [vmem:[%s5533_s20] sm:$0xff]  ;;  %v64_v6 = vld [vmem:[%s5533_s20 + $0x8] sm:$0xff]  ;;  %4361 = vmatprep.subr.mxu1 %v4780_v50  ;;  %s4787_s20 = smov 24  }
   0x9   :  { %v77_v2 = vld [vmem:[%s5534_s22] sm:$0xff]  ;;  %68 = vperm.xlu0 %4659, %v63_v1   ;;  %v78_v3 = vld [vmem:[%s5534_s22 + $0x8] sm:$0xff]  ;;  %v79_v4 = vld [vmem:[%s5534_s22 + $0x10] sm:$0xff] }
   0xa   :  { %v80_v5 = vld [vmem:[%s5534_s22 + $0x18] sm:$0xff]  ;;  %v4617_v7 = vpack.c.bf16 %v78_v3, %v77_v2  ;;  %v81_v9 = vld [vmem:[%s5534_s22 + $0x20] sm:$0xff]  ;;  %v82_v10 = vld [vmem:[%s5534_s22 + $0x28] sm:$0xff] }
   0xb   :  { %v4621_v8 = vpack.c.bf16 %v80_v5, %v79_v4  ;;  %v4625_v11 = vpack.c.bf16 %v82_v10, %v81_v9  ;;  %v83_v12 = vld [vmem:[%s5534_s22 + $0x30] sm:$0xff]  ;;  %v84_v13 = vld [vmem:[%s5534_s22 + $0x38] sm:$0xff]  ;;  %v85_v15 = vld [vmem:[%s5534_s22 + $0x40] sm:$0xff] }
   0xc   :  { %4618 = vmatprep.subr.bf16.mxu0 %v4617_v7  ;;  %v4629_v14 = vpack.c.bf16 %v84_v13, %v83_v12  ;;  %v86_v16 = vld [vmem:[%s5534_s22 + $0x48] sm:$0xff]  ;;  %v87_v18 = vld [vmem:[%s5534_s22 + $0x50] sm:$0xff]  ;;  %v88_v19 = vld [vmem:[%s5534_s22 + $0x58] sm:$0xff] }
   0xd   :  { %71 = vperm.xlu0 %4659, %v64_v6   ;;  %4620 = vmatpush3.bf16.msra.mxu0 %v4617_v7  ;;  %v4633_v17 = vpack.c.bf16 %v86_v16, %v85_v15  ;;  %v4637_v20 = vpack.c.bf16 %v88_v19, %v87_v18  ;;  %v89_v21 = vld [vmem:[%s5534_s22 + $0x60] sm:$0xff]  ;;  %v90_v22 = vld [vmem:[%s5534_s22 + $0x68] sm:$0xff]  ;;  %v91_v24 = vld [vmem:[%s5534_s22 + $0x70] sm:$0xff]  ;;  %v172_v15 = vshrl.u32 %v65_v27, 7 }
   0xe   :  { %4622 = vmatprep.subr.bf16.mxu0 %v4621_v8  ;;  %v4641_v23 = vpack.c.bf16 %v90_v22, %v89_v21  ;;  %v92_v25 = vld [vmem:[%s5534_s22 + $0x78] sm:$0xff]  ;;  %v168_v32 = vld [vmem:[%s5535_s26] sm:$0xff]  ;;  %v4662_v52 = vld [vmem:[%s5536_s29 + $0x8] sm:$0xff]   ;;  %s4783_s26 = smov 120  }
   0xf   :  { %v4645_v26 = vpack.c.bf16 %v92_v25, %v91_v24  ;;  %v4660_v49 = vld [vmem:[%s5536_s29] sm:$0xff]   ;;  %vm5022_vm5 = vcmp.le.s32.totalorder %v4943_v28, %v172_v15 }
  0x10   :  { %v4037_v2 = vld [vmem:[%s5512_s4] ss:$0 sm:$0xff] }
  0x11   :  { %4624 = vmatpush3.bf16.msra.mxu0 %v4621_v8 }
  0x12   :  { %4626 = vmatprep.subr.bf16.mxu0 %v4625_v11 }
  0x15   :  { %4628 = vmatpush3.bf16.msra.mxu0 %v4625_v11 }
  0x16   :  { %4630 = vmatprep.subr.bf16.mxu0 %v4629_v14 }
  0x19   :  { %4632 = vmatpush3.bf16.msra.mxu0 %v4629_v14 }
  0x1a   :  { %4634 = vmatprep.subr.bf16.mxu0 %v4633_v17 }
  0x1d   :  { %4636 = vmatpush3.bf16.msra.mxu0 %v4633_v17 }
  0x1e   :  { %4638 = vmatprep.subr.bf16.mxu0 %v4637_v20 }
  0x21   :  { %4640 = vmatpush3.bf16.msra.mxu0 %v4637_v20 }
  0x22   :  { %4642 = vmatprep.subr.bf16.mxu0 %v4641_v23 }
  0x25   :  { %4644 = vmatpush3.bf16.msra.mxu0 %v4641_v23 }
  0x26   :  { %4646 = vmatprep.subr.bf16.mxu0 %v4645_v26 }
  0x29   :  { %4648 = vmatpush3.bf16.msra.mxu0 %v4645_v26 }
  0x2a   :  { %4345 = vmatprep.subr.bf16.mxu0 %v4780_v50 }
  0x88   :  { %v69_v29 = vpop.permute.xlu0 %68 }
  0x89   :  { %vm73_vm0 = vcmp.eq.s32.totalorder %v4943_v28, %v69_v29 }
  0x8a   :  { %4342 = vmatprep.mubr.msk.f32.mxu0 %vm73_vm0, %v4779_v30 }
  0x8c   :  { %v72_v31 = vpop.permute.xlu0 %71 }
  0x8d   :  { %vm74_vm1 = vcmp.eq.s32.totalorder %v4943_v28, %v72_v31 }
  0x8e   :  { %4343 = vmatmul.mubr.msk.f32.vlgmr.msra.gmra.mrb[0].mxu0 %vm74_vm1, %v4779_v30 }
  0x8f   :  { %4346 = vmatpush3.bf16.msra.mxu0 %v4660_v49  ;;  %4349 = vmatprep.mubr.msk.bf16.mxu0 %vm4781_vm3, %v4780_v50 }
  0x90   :  { %4347 = vmatprep.subr.bf16.mxu0 %v4780_v50 }
  0x93   :  { %4348 = vmatpush3.bf16.msra.mxu0 %v4662_v52 }
  0x94   :  { %4376 = vmatprep.subr.mxu0 %v4780_v50 }
 0x161   :  { %v4344_v33 = vpop.f32.mrb[0].mxu0 }
 0x162   :  { %v159_v34 = vpop.f32.mrb[1].mxu0  ;;  %v4952_v36 = vadd.f32 %v4344_v33, %v168_v32 }
 0x163   :  { %v4950_v35 = vadd.f32 %v168_v32, %v159_v34 }
 0x164   :  { %v180_v38 = vsel %vm176_vm2, %v4952_v36, 0.0 }
 0x165   :  { %v177_v37 = vsel %vm176_vm2, %v4950_v35, 0.0 }
 0x166   :  { %178 = vadd.xlane.f32.xlu1 %v177_v37 }
 0x16a   :  { %181 = vadd.xlane.f32.xlu1 %v180_v38 }
 0x1f3   :  { %v179_v39 = vpop.xlane.xlu1 %178 }
 0x1f4   :  { %v184_v40 = vmul.f32 0.03125, %v179_v39 }
 0x1f6   :  { %v186_v41 = vsub.f32 %v4950_v35, %v184_v40 }
 0x1f7   :  { %v182_v42 = vpop.xlane.xlu1 %181 }
 0x1f8   :  { %v185_v43 = vmul.f32 0.03125, %v182_v42  ;;  %v188_v44 = vmul.f32 %v186_v41, %v186_v41 }
 0x1fa   :  { %v187_v45 = vsub.f32 %v4952_v36, %v185_v43  ;;  %v190_v46 = vsel %vm176_vm2, %v188_v44, 0.0 }
 0x1fb   :  { %191 = vadd.xlane.f32.xlu0 %v190_v46 }
 0x1fc   :  { %v189_v47 = vmul.f32 %v187_v45, %v187_v45 }
 0x1fe   :  { %v193_v48 = vsel %vm176_vm2, %v189_v47, 0.0 }
 0x1ff   :  { %194 = vadd.xlane.f32.xlu1 %v193_v48 }
 0x288   :  { %v192_v54 = vpop.xlane.xlu0 %191 }
 0x289   :  { %v196_v55 = vmul.f32 0.03125, %v192_v54 }
 0x28b   :  { %v198_v56 = vadd.f32 1e-05, %v196_v55 }
 0x28c   :  { %v195_v57 = vpop.xlane.xlu1 %194 }
 0x28d   :  { %4694 = vrsqrt.f32 %v198_v56  ;;  %v197_v58 = vmul.f32 0.03125, %v195_v57 }
 0x28f   :  { %v199_v59 = vadd.f32 1e-05, %v197_v58 }
 0x291   :  { %4696 = vrsqrt.f32 %v199_v59 }
 0x297   :  { %v4695_v60 = vpop.eup %4694 }
 0x298   :  { %v202_v61 = vmul.f32 %v4695_v60, %v186_v41 }
 0x29a   :  { %v210_v0 = vmul.f32 %v4036_v62, %v202_v61 }
 0x29b   :  { %v4697_v63 = vpop.eup %4696 }
 0x29c   :  { %v203_v1 = vmul.f32 %v4697_v63, %v187_v45  ;;  %v218_v4 = vadd.f32 %v4037_v2, %v210_v0 }
 0x29e   :  { %v211_v3 = vmul.f32 %v4036_v62, %v203_v1 }
 0x2a0   :  { %v219_v5 = vadd.f32 %v4037_v2, %v211_v3 }
 0x2a2   :  { %v220_v6 = vpack.c.bf16 %v219_v5, %v218_v4 }
 0x2a4   :  { %4350 = vmatmul.mubr.msk.bf16.vlgmr.msra.gmra.mrb[4].mxu0 %vm176_vm2, %v220_v6  ;;  %4358 = vmatmul.mubr.msk.bf16.vlgmr.msra.gmra.mrb[0].mxu1 %vm176_vm2, %v220_v6 }
 0x2a5   :  { %4363 = vmatprep.mubr.msk.f32.mxu1 %vm4781_vm3, %v4780_v50  ;;  %4378 = vmatprep.mubr.msk.f32.mxu0 %vm4781_vm3, %v4780_v50 }
 0x377   :  { %v274_v7 = vpop.f32.mrb[4].mxu0  ;;  %v331_v8 = vpop.f32.mrb[0].mxu1 }
 0x378   :  { %v4359_v9 = vpop.f32.mrb[1].mxu1  ;;  %1032 = vrot.lane.b32.xlu0 %v274_v7, %s4782_s5  ;;  %677 = vrot.lane.b32.xlu1 %v274_v7, %s4783_s26  ;;  %v4351_v10 = vpop.f32.mrb[5].mxu0 }
 0x379   :  { %4362 = vmatpush3.xpose.msk.msra.mxu1 %vm338_vm4, %v274_v7  ;;  %v277_v11 = vpop.f32.mrb[6].mxu0  ;;  %v334_v12 = vpop.f32.mrb[2].mxu1 }
 0x37a   :  { %v4352_v13 = vpop.f32.mrb[7].mxu0  ;;  %v4360_v14 = vpop.f32.mrb[3].mxu1  ;;  %4377 = vmatpush3.msra.mxu0 %v334_v12  ;;  %4366 = vmatprep.subr.mxu1 %v4780_v50 }
 0x37b   :  { %4386 = vmatprep.subr.mxu0 %v4780_v50 }
 0x37c   :  { %4364 = vmatmul.mubr.msk.f32.vlgmr.msra.gmra.mrb[4].mxu1 %vm338_vm4, %v274_v7  ;;  %1575 = vrot.lane.b32.xlu0 %v331_v8, %s4784_s27 }
 0x37d   :  { %751 = vrot.lane.b32.xlu1 %v277_v11, %s4783_s26  ;;  %4367 = vmatpush3.xpose.msk.msra.mxu1 %vm338_vm4, %v277_v11 }
 0x37e   :  { %4368 = vmatprep.mubr.msk.f32.mxu1 %vm4781_vm3, %v4780_v50  ;;  %4371 = vmatprep.subr.mxu1 %v4780_v50 }
 0x380   :  { %4369 = vmatmul.mubr.msk.f32.vlgmr.msra.gmra.mrb[6].mxu1 %vm338_vm4, %v277_v11 }
 0x381   :  { %868 = vrot.lane.b32.xlu1 %v331_v8, %s4783_s26  ;;  %4372 = vmatpush3.msra.mxu1 %v331_v8 }
 0x382   :  { %4373 = vmatprep.mubr.msk.f32.mxu1 %vm4781_vm3, %v4780_v50  ;;  %4381 = vmatprep.subr.mxu1 %v4780_v50 }
 0x385   :  { %945 = vrot.lane.b32.xlu1 %v334_v12, %s4783_s26 }
 0x389   :  { %1106 = vrot.lane.b32.xlu1 %v277_v11, %s4782_s5 }
 0x38d   :  { %1222 = vrot.lane.b32.xlu1 %v331_v8, %s4782_s5 }
 0x391   :  { %1298 = vrot.lane.b32.xlu1 %v334_v12, %s4782_s5 }
 0x395   :  { %1385 = vrot.lane.b32.xlu1 %v274_v7, %s4784_s27 }
 0x399   :  { %1459 = vrot.lane.b32.xlu1 %v277_v11, %s4784_s27 }
 0x39d   :  { %1651 = vrot.lane.b32.xlu1 %v334_v12, %s4784_s27 }
 0x3ea   :  { %v678_v62 = vpop.permute.xlu1 %677 }
 0x3ef   :  { %v752_v63 = vpop.permute.xlu1 %751 }
 0x3f3   :  { %v869_v3 = vpop.permute.xlu1 %868 }
 0x3f7   :  { %v946_v5 = vpop.permute.xlu1 %945 }
 0x44f   :  { %v408_v17 = vpop.f32.mrb[4].mxu1 }
 0x450   :  { %v485_v18 = vmul.f32 0.17677669, %v408_v17  ;;  %v4365_v19 = vpop.f32.mrb[5].mxu1 }
 0x452   :  { %v489_v20 = vsel %vm5022_vm5, %v485_v18, -1e+30 }
 0x453   :  { %v491_v21 = vsel %vm338_vm4, %v489_v20, -inf  ;;  %v481_v22 = vpop.f32.mrb[6].mxu1 }
 0x454   :  { %v492_v23 = vrot.slane %v491_v21, 4  ;;  %v486_v24 = vmul.f32 0.17677669, %v481_v22  ;;  %v4370_v25 = vpop.f32.mrb[7].mxu1 }
 0x456   :  { %v493_v26 = vmax.f32 %v491_v21, %v492_v23  ;;  %v490_v27 = vsel %vm5022_vm5, %v486_v24, -1e+30 }
 0x457   :  { %v498_v28 = vsel %vm338_vm4, %v490_v27, -inf }
 0x458   :  { %v494_v29 = vrot.slane %v493_v26, 2  ;;  %v499_v30 = vrot.slane %v498_v28, 4 }
 0x45a   :  { %v495_v31 = vmax.f32 %v493_v26, %v494_v29  ;;  %v500_v32 = vmax.f32 %v498_v28, %v499_v30 }
 0x45c   :  { %v496_v33 = vrot.slane %v495_v31, 1  ;;  %v501_v34 = vrot.slane %v500_v32, 2 }
 0x45e   :  { %v497_v37 = vmax.f32 %v495_v31, %v496_v33  ;;  %v502_v38 = vmax.f32 %v500_v32, %v501_v34 }
 0x460   :  { %v505_v39 = vsub.f32 %v489_v20, %v497_v37  ;;  %v503_v40 = vrot.slane %v502_v38, 1 }
 0x462   :  { %v507_v41 = vmul.f32 1.442695, %v505_v39  ;;  %v504_v42 = vmax.f32 %v502_v38, %v503_v40 }
 0x464   :  { %4698 = vpow2.f32 %v507_v41  ;;  %v506_v43 = vsub.f32 %v490_v27, %v504_v42 }
 0x466   :  { %v509_v44 = vmul.f32 1.442695, %v506_v43 }
 0x468   :  { %4700 = vpow2.f32 %v509_v44 }
 0x46e   :  { %v4699_v45 = vpop.eup %4698 }
 0x46f   :  { %v511_v46 = vsel %vm338_vm4, %v4699_v45, 0.0 }
 0x470   :  { %v512_v47 = vrot.slane %v511_v46, 4 }
 0x472   :  { %v4701_v48 = vpop.eup %4700  ;;  %v513_v49 = vadd.f32 %v512_v47, %v511_v46 }
 0x473   :  { %v518_v51 = vsel %vm338_vm4, %v4701_v48, 0.0 }
 0x474   :  { %v514_v52 = vrot.slane %v513_v49, 2  ;;  %v519_v53 = vrot.slane %v518_v51, 4 }
 0x476   :  { %v515_v54 = vadd.f32 %v514_v52, %v513_v49  ;;  %v520_v55 = vadd.f32 %v519_v53, %v518_v51 }
 0x478   :  { %v516_v56 = vrot.slane %v515_v54, 1  ;;  %v521_v57 = vrot.slane %v520_v55, 2 }
 0x47a   :  { %v517_v58 = vadd.f32 %v516_v56, %v515_v54  ;;  %v522_v59 = vadd.f32 %v521_v57, %v520_v55  ;;  %v1107_v56 = vpop.permute.xlu1 %1106 }
 0x47c   :  { %4702 = vrcp.f32 %v517_v58  ;;  %v523_v60 = vrot.slane %v522_v59, 1 }
 0x47e   :  { %v524_v61 = vadd.f32 %v523_v60, %v522_v59  ;;  %v1033_v59 = vpop.permute.xlu0 %1032 }
 0x480   :  { %4704 = vrcp.f32 %v524_v61  ;;  %v1223_v61 = vpop.permute.xlu1 %1222 }
 0x486   :  { %v4703_v0 = vpop.eup %4702 }
 0x487   :  { %v527_v1 = vmul.f32 %v4703_v0, %v4699_v45 }
 0x489   :  { %4374 = vmatmul.mubr.msk.f32.vlgmr.msra.gmra.mrb[8].mxu1 %vm338_vm4, %v527_v1 }
 0x48a   :  { %v4705_v2 = vpop.eup %4704  ;;  %4382 = vmatpush3.xpose.msk.msra.mxu1 %vm338_vm4, %v678_v62  ;;  %4383 = vmatprep.mubr.msk.f32.mxu1 %vm4781_vm3, %v4780_v50 }
 0x48b   :  { %4391 = vmatprep.subr.mxu1 %v4780_v50  ;;  %v528_v4 = vmul.f32 %v4705_v2, %v4701_v48 }
 0x48d   :  { %4379 = vmatmul.mubr.msk.f32.vlgmr.msra.gmra.mrb[2].mxu0 %vm338_vm4, %v528_v4  ;;  %4384 = vmatmul.mubr.msk.f32.vlgmr.msra.gmra.mrb[10].mxu1 %vm338_vm4, %v678_v62 }
 0x48e   :  { %4387 = vmatpush3.xpose.msk.msra.mxu0 %vm338_vm4, %v752_v63  ;;  %4392 = vmatpush3.msra.mxu1 %v869_v3 }
 0x48f   :  { %4388 = vmatprep.mubr.msk.f32.mxu0 %vm4781_vm3, %v4780_v50  ;;  %4396 = vmatprep.subr.mxu0 %v4780_v50 }
 0x490   :  { %4393 = vmatprep.mubr.msk.f32.mxu1 %vm4781_vm3, %v4780_v50  ;;  %4401 = vmatprep.subr.mxu1 %v4780_v50 }
 0x491   :  { %4389 = vmatmul.mubr.msk.f32.vlgmr.msra.gmra.mrb[8].mxu0 %vm338_vm4, %v752_v63  ;;  %v1299_v63 = vpop.permute.xlu1 %1298 }
 0x492   :  { %4397 = vmatpush3.msra.mxu0 %v946_v5  ;;  %4398 = vmatprep.mubr.msk.f32.mxu0 %vm4781_vm3, %v4780_v50 }
 0x493   :  { %4406 = vmatprep.subr.mxu0 %v4780_v50 }
 0x55c   :  { %v598_v6 = vpop.f32.mrb[8].mxu1 }
 0x55d   :  { %675 = vst.msk [vmem:[#allocation2] sm:$0xff] %vm338_vm4, %v598_v6  ;;  %v4375_v7 = vpop.f32.mrb[9].mxu1 }
 0x560   :  { %v671_v8 = vpop.f32.mrb[2].mxu0  ;;  %v747_v9 = vpop.f32.mrb[10].mxu1 }
 0x561   :  { %676 = vst.msk [vmem:[#allocation2 + $0x8] sm:$0xff] %vm338_vm4, %v671_v8  ;;  %v825_v10 = vmul.f32 0.17677669, %v747_v9  ;;  %v4380_v11 = vpop.f32.mrb[3].mxu0  ;;  %v4385_v12 = vpop.f32.mrb[11].mxu1 }
 0x563   :  { %v827_v13 = vsel %vm5022_vm5, %v825_v10, -1e+30 }
 0x564   :  { %v829_v14 = vsel %vm338_vm4, %v827_v13, -inf  ;;  %v821_v15 = vpop.f32.mrb[8].mxu0 }
 0x565   :  { %v830_v17 = vrot.slane %v829_v14, 4  ;;  %v826_v18 = vmul.f32 0.17677669, %v821_v15  ;;  %v4390_v19 = vpop.f32.mrb[9].mxu0 }
 0x567   :  { %v831_v20 = vmax.f32 %v829_v14, %v830_v17  ;;  %v828_v21 = vsel %vm5022_vm5, %v826_v18, -1e+30 }
 0x568   :  { %v836_v22 = vsel %vm338_vm4, %v828_v21, -inf }
 0x569   :  { %v832_v23 = vrot.slane %v831_v20, 2  ;;  %v837_v24 = vrot.slane %v836_v22, 4 }
 0x56b   :  { %v833_v25 = vmax.f32 %v831_v20, %v832_v23  ;;  %v838_v26 = vmax.f32 %v836_v22, %v837_v24 }
 0x56d   :  { %v834_v27 = vrot.slane %v833_v25, 1  ;;  %v839_v28 = vrot.slane %v838_v26, 2 }
 0x56f   :  { %v835_v29 = vmax.f32 %v833_v25, %v834_v27  ;;  %v840_v30 = vmax.f32 %v838_v26, %v839_v28 }
 0x571   :  { %v843_v31 = vsub.f32 %v827_v13, %v835_v29  ;;  %v841_v32 = vrot.slane %v840_v30, 1 }
 0x573   :  { %v845_v33 = vmul.f32 1.442695, %v843_v31  ;;  %v842_v34 = vmax.f32 %v840_v30, %v841_v32 }
 0x575   :  { %4706 = vpow2.f32 %v845_v33  ;;  %v844_v37 = vsub.f32 %v828_v21, %v842_v34 }
 0x577   :  { %v847_v38 = vmul.f32 1.442695, %v844_v37 }
 0x579   :  { %4708 = vpow2.f32 %v847_v38 }
 0x57f   :  { %v4707_v39 = vpop.eup %4706 }
 0x580   :  { %v849_v40 = vsel %vm338_vm4, %v4707_v39, 0.0 }
 0x581   :  { %v850_v41 = vrot.slane %v849_v40, 4 }
 0x583   :  { %v4709_v42 = vpop.eup %4708  ;;  %v851_v43 = vadd.f32 %v850_v41, %v849_v40 }
 0x584   :  { %v856_v44 = vsel %vm338_vm4, %v4709_v42, 0.0 }
 0x585   :  { %v852_v45 = vrot.slane %v851_v43, 2  ;;  %v857_v46 = vrot.slane %v856_v44, 4 }
 0x587   :  { %v853_v47 = vadd.f32 %v852_v45, %v851_v43  ;;  %v858_v48 = vadd.f32 %v857_v46, %v856_v44 }
 0x589   :  { %v854_v49 = vrot.slane %v853_v47, 1  ;;  %v859_v51 = vrot.slane %v858_v48, 2 }
 0x58b   :  { %v855_v52 = vadd.f32 %v854_v49, %v853_v47  ;;  %v860_v53 = vadd.f32 %v859_v51, %v858_v48  ;;  %v1386_v49 = vpop.permute.xlu1 %1385 }
 0x58d   :  { %4710 = vrcp.f32 %v855_v52  ;;  %v861_v54 = vrot.slane %v860_v53, 1 }
 0x58f   :  { %v862_v55 = vadd.f32 %v861_v54, %v860_v53  ;;  %v1460_v54 = vpop.permute.xlu1 %1459 }
 0x591   :  { %4712 = vrcp.f32 %v862_v55 }
 0x597   :  { %v4711_v57 = vpop.eup %4710 }
 0x598   :  { %v865_v58 = vmul.f32 %v4711_v57, %v4707_v39  ;;  %v1652_v57 = vpop.permute.xlu1 %1651 }
 0x59a   :  { %4394 = vmatmul.mubr.msk.f32.vlgmr.msra.gmra.mrb[12].mxu1 %vm338_vm4, %v865_v58 }
 0x59b   :  { %v4713_v60 = vpop.eup %4712  ;;  %4402 = vmatpush3.xpose.msk.msra.mxu1 %vm338_vm4, %v1033_v59  ;;  %4403 = vmatprep.mubr.msk.f32.mxu1 %vm4781_vm3, %v4780_v50 }
 0x59c   :  { %4411 = vmatprep.subr.mxu1 %v4780_v50  ;;  %v866_v62 = vmul.f32 %v4713_v60, %v4709_v42 }
 0x59e   :  { %4399 = vmatmul.mubr.msk.f32.vlgmr.msra.gmra.mrb[10].mxu0 %vm338_vm4, %v866_v62  ;;  %4404 = vmatmul.mubr.msk.f32.vlgmr.msra.gmra.mrb[14].mxu1 %vm338_vm4, %v1033_v59 }
 0x59f   :  { %4407 = vmatpush3.xpose.msk.msra.mxu0 %vm338_vm4, %v1107_v56  ;;  %4412 = vmatpush3.msra.mxu1 %v1223_v61 }
 0x5a0   :  { %4408 = vmatprep.mubr.msk.f32.mxu0 %vm4781_vm3, %v4780_v50  ;;  %4416 = vmatprep.subr.mxu0 %v4780_v50 }
 0x5a1   :  { %4413 = vmatprep.mubr.msk.f32.mxu1 %vm4781_vm3, %v4780_v50  ;;  %4421 = vmatprep.subr.mxu1 %v4780_v50 }
 0x5a2   :  { %4409 = vmatmul.mubr.msk.f32.vlgmr.msra.gmra.mrb[12].mxu0 %vm338_vm4, %v1107_v56  ;;  %v1576_v56 = vpop.permute.xlu0 %1575 }
 0x5a3   :  { %4417 = vmatpush3.msra.mxu0 %v1299_v63  ;;  %4418 = vmatprep.mubr.msk.f32.mxu0 %vm4781_vm3, %v4780_v50 }
 0x5a4   :  { %4426 = vmatprep.subr.mxu0 %v4780_v50 }
 0x66d   :  { %v940_v0 = vpop.f32.mrb[12].mxu1 }
 0x66e   :  { %1023 = vrot.lane.b32.xlu0 %v940_v0, %s4785_s28  ;;  %v4395_v1 = vpop.f32.mrb[13].mxu1 }
 0x671   :  { %v1017_v2 = vpop.f32.mrb[10].mxu0  ;;  %v1102_v3 = vpop.f32.mrb[14].mxu1 }
 0x672   :  { %v1180_v4 = vmul.f32 0.17677669, %v1102_v3  ;;  %v4405_v5 = vpop.f32.mrb[15].mxu1  ;;  %1025 = vrot.lane.b32.xlu1 %v1017_v2, %s4785_s28  ;;  %v4400_v6 = vpop.f32.mrb[11].mxu0 }
 0x674   :  { %v1182_v7 = vsel %vm5022_vm5, %v1180_v4, -1e+30 }
 0x675   :  { %v1184_v8 = vsel %vm338_vm4, %v1182_v7, -inf  ;;  %v1176_v9 = vpop.f32.mrb[12].mxu0 }
 0x676   :  { %v1185_v10 = vrot.slane %v1184_v8, 4  ;;  %v1181_v11 = vmul.f32 0.17677669, %v1176_v9  ;;  %v4410_v12 = vpop.f32.mrb[13].mxu0 }
 0x678   :  { %v1186_v13 = vmax.f32 %v1184_v8, %v1185_v10  ;;  %v1183_v14 = vsel %vm5022_vm5, %v1181_v11, -1e+30 }
 0x679   :  { %v1191_v15 = vsel %vm338_vm4, %v1183_v14, -inf }
 0x67a   :  { %v1187_v17 = vrot.slane %v1186_v13, 2  ;;  %v1192_v18 = vrot.slane %v1191_v15, 4 }
 0x67c   :  { %v1188_v19 = vmax.f32 %v1186_v13, %v1187_v17  ;;  %v1193_v20 = vmax.f32 %v1191_v15, %v1192_v18 }
 0x67e   :  { %v1189_v21 = vrot.slane %v1188_v19, 1  ;;  %v1194_v22 = vrot.slane %v1193_v20, 2 }
 0x680   :  { %v1190_v23 = vmax.f32 %v1188_v19, %v1189_v21  ;;  %v1195_v24 = vmax.f32 %v1193_v20, %v1194_v22 }
 0x682   :  { %v1198_v25 = vsub.f32 %v1182_v7, %v1190_v23  ;;  %v1196_v26 = vrot.slane %v1195_v24, 1 }
 0x684   :  { %v1200_v27 = vmul.f32 1.442695, %v1198_v25  ;;  %v1197_v28 = vmax.f32 %v1195_v24, %v1196_v26 }
 0x686   :  { %4714 = vpow2.f32 %v1200_v27  ;;  %v1199_v29 = vsub.f32 %v1183_v14, %v1197_v28 }
 0x688   :  { %v1202_v30 = vmul.f32 1.442695, %v1199_v29 }
 0x68a   :  { %4716 = vpow2.f32 %v1202_v30 }
 0x690   :  { %v4715_v31 = vpop.eup %4714 }
 0x691   :  { %v1204_v32 = vsel %vm338_vm4, %v4715_v31, 0.0 }
 0x692   :  { %v1205_v33 = vrot.slane %v1204_v32, 4 }
 0x694   :  { %v4717_v34 = vpop.eup %4716  ;;  %v1206_v37 = vadd.f32 %v1205_v33, %v1204_v32 }
 0x695   :  { %v1211_v38 = vsel %vm338_vm4, %v4717_v34, 0.0 }
 0x696   :  { %v1207_v39 = vrot.slane %v1206_v37, 2  ;;  %v1212_v40 = vrot.slane %v1211_v38, 4 }
 0x698   :  { %v1208_v41 = vadd.f32 %v1207_v39, %v1206_v37  ;;  %v1213_v42 = vadd.f32 %v1212_v40, %v1211_v38 }
 0x69a   :  { %v1209_v43 = vrot.slane %v1208_v41, 1  ;;  %v1214_v44 = vrot.slane %v1213_v42, 2 }
 0x69c   :  { %v1210_v45 = vadd.f32 %v1209_v43, %v1208_v41  ;;  %v1215_v46 = vadd.f32 %v1214_v44, %v1213_v42 }
 0x69e   :  { %4718 = vrcp.f32 %v1210_v45  ;;  %v1216_v47 = vrot.slane %v1215_v46, 1 }
 0x6a0   :  { %v1217_v48 = vadd.f32 %v1216_v47, %v1215_v46 }
 0x6a2   :  { %4720 = vrcp.f32 %v1217_v48 }
 0x6a8   :  { %v4719_v51 = vpop.eup %4718 }
 0x6a9   :  { %v1220_v52 = vmul.f32 %v4719_v51, %v4715_v31 }
 0x6ab   :  { %4414 = vmatmul.mubr.msk.f32.vlgmr.msra.gmra.mrb[16].mxu1 %vm338_vm4, %v1220_v52  ;;  %v4664_v52 = vld [vmem:[%s5513_s7] sm:$0xff]  }
 0x6ac   :  { %v4721_v53 = vpop.eup %4720  ;;  %4422 = vmatpush3.xpose.msk.msra.mxu1 %vm338_vm4, %v1386_v49  ;;  %4423 = vmatprep.mubr.msk.f32.mxu1 %vm4781_vm3, %v4780_v50 }
 0x6ad   :  { %4431 = vmatprep.subr.mxu1 %v4780_v50  ;;  %v1221_v55 = vmul.f32 %v4721_v53, %v4717_v34  ;;  %v4665_v53 = vld [vmem:[%s5513_s7 + $0x8] sm:$0xff]  }
 0x6af   :  { %4419 = vmatmul.mubr.msk.f32.vlgmr.msra.gmra.mrb[14].mxu0 %vm338_vm4, %v1221_v55  ;;  %4424 = vmatmul.mubr.msk.f32.vlgmr.msra.gmra.mrb[18].mxu1 %vm338_vm4, %v1386_v49 }
 0x6b0   :  { %4427 = vmatpush3.xpose.msk.msra.mxu0 %vm338_vm4, %v1460_v54  ;;  %4432 = vmatpush3.msra.mxu1 %v1576_v56 }
 0x6b1   :  { %4428 = vmatprep.mubr.msk.f32.mxu0 %vm4781_vm3, %v4780_v50  ;;  %4436 = vmatprep.subr.mxu0 %v4780_v50 }
 0x6b2   :  { %4433 = vmatprep.mubr.msk.f32.mxu1 %vm4781_vm3, %v4780_v50  ;;  %4441 = vmatprep.subr.bf16.mxu1 %v4780_v50 }
 0x6b3   :  { %4429 = vmatmul.mubr.msk.f32.vlgmr.msra.gmra.mrb[16].mxu0 %vm338_vm4, %v1460_v54 }
 0x6b4   :  { %4437 = vmatpush3.msra.mxu0 %v1652_v57  ;;  %4438 = vmatprep.mubr.msk.f32.mxu0 %vm4781_vm3, %v4780_v50 }
 0x6b5   :  { %4449 = vmatprep.subr.bf16.mxu0 %v4780_v50 }
 0x6e0   :  { %v1024_v58 = vpop.permute.xlu0 %1023 }
 0x6e1   :  { %1030 = vst.msk [vmem:[#allocation2] sm:$0xff] %vm1029_vm6, %v1024_v58 }
 0x6e4   :  { %v1026_v59 = vpop.permute.xlu1 %1025 }
 0x6e5   :  { %1031 = vst.msk [vmem:[#allocation2 + $0x8] sm:$0xff] %vm1029_vm6, %v1026_v59 }
 0x77e   :  { %v1294_v60 = vpop.f32.mrb[16].mxu1 }
 0x77f   :  { %1376 = vrot.lane.b32.xlu0 %v1294_v60, %s4786_s0  ;;  %v4415_v61 = vpop.f32.mrb[17].mxu1 }
 0x782   :  { %v1370_v62 = vpop.f32.mrb[14].mxu0  ;;  %v1455_v63 = vpop.f32.mrb[18].mxu1 }
 0x783   :  { %v1533_v0 = vmul.f32 0.17677669, %v1455_v63  ;;  %v4425_v1 = vpop.f32.mrb[19].mxu1  ;;  %1378 = vrot.lane.b32.xlu1 %v1370_v62, %s4786_s0  ;;  %v4420_v2 = vpop.f32.mrb[15].mxu0 }
 0x785   :  { %v1535_v3 = vsel %vm5022_vm5, %v1533_v0, -1e+30  ;;  %v4071_v0 = vld [vmem:[%s5514_s8] ss:$0 sm:$0xff] }
 0x786   :  { %v1537_v4 = vsel %vm338_vm4, %v1535_v3, -inf  ;;  %v1529_v5 = vpop.f32.mrb[16].mxu0 }
 0x787   :  { %v1538_v6 = vrot.slane %v1537_v4, 4  ;;  %v1534_v7 = vmul.f32 0.17677669, %v1529_v5  ;;  %v4430_v8 = vpop.f32.mrb[17].mxu0 }
 0x789   :  { %v1539_v9 = vmax.f32 %v1537_v4, %v1538_v6  ;;  %v1536_v10 = vsel %vm5022_vm5, %v1534_v7, -1e+30 }
 0x78a   :  { %v1544_v11 = vsel %vm338_vm4, %v1536_v10, -inf }
 0x78b   :  { %v1540_v12 = vrot.slane %v1539_v9, 2  ;;  %v1545_v13 = vrot.slane %v1544_v11, 4 }
 0x78d   :  { %v1541_v14 = vmax.f32 %v1539_v9, %v1540_v12  ;;  %v1546_v15 = vmax.f32 %v1544_v11, %v1545_v13 }
 0x78f   :  { %v1542_v17 = vrot.slane %v1541_v14, 1  ;;  %v1547_v18 = vrot.slane %v1546_v15, 2 }
 0x791   :  { %v1543_v19 = vmax.f32 %v1541_v14, %v1542_v17  ;;  %v1548_v20 = vmax.f32 %v1546_v15, %v1547_v18 }
 0x793   :  { %v1551_v21 = vsub.f32 %v1535_v3, %v1543_v19  ;;  %v1549_v22 = vrot.slane %v1548_v20, 1  ;;  %v4666_v19 = vld [vmem:[%s5515_s11] sm:$0xff]  }
 0x795   :  { %v1553_v23 = vmul.f32 1.442695, %v1551_v21  ;;  %v1550_v24 = vmax.f32 %v1548_v20, %v1549_v22  ;;  %v4667_v20 = vld [vmem:[%s5515_s11 + $0x8] sm:$0xff]   ;;  %v4668_v21 = vld [vmem:[%s5516_s13] sm:$0xff]  }
 0x796   :  { %v4669_v22 = vld [vmem:[%s5516_s13 + $0x8] sm:$0xff]  }
 0x797   :  { %4722 = vpow2.f32 %v1553_v23  ;;  %v1552_v25 = vsub.f32 %v1536_v10, %v1550_v24  ;;  %v4670_v23 = vld [vmem:[%s5516_s13 + $0x10] sm:$0xff]   ;;  %v4671_v24 = vld [vmem:[%s5516_s13 + $0x18] sm:$0xff]  }
 0x799   :  { %v1555_v26 = vmul.f32 1.442695, %v1552_v25  ;;  %v4672_v25 = vld [vmem:[%s5516_s13 + $0x20] sm:$0xff]  }
 0x79b   :  { %4724 = vpow2.f32 %v1555_v26  ;;  %v4673_v26 = vld [vmem:[%s5516_s13 + $0x28] sm:$0xff]  }
 0x7a1   :  { %v4723_v27 = vpop.eup %4722 }
 0x7a2   :  { %v1557_v28 = vsel %vm338_vm4, %v4723_v27, 0.0 }
 0x7a3   :  { %v1558_v29 = vrot.slane %v1557_v28, 4 }
 0x7a5   :  { %v4725_v30 = vpop.eup %4724  ;;  %v1559_v31 = vadd.f32 %v1558_v29, %v1557_v28 }
 0x7a6   :  { %v1564_v32 = vsel %vm338_vm4, %v4725_v30, 0.0 }
 0x7a7   :  { %v1560_v33 = vrot.slane %v1559_v31, 2  ;;  %v1565_v34 = vrot.slane %v1564_v32, 4 }
 0x7a9   :  { %v1561_v37 = vadd.f32 %v1560_v33, %v1559_v31  ;;  %v1566_v38 = vadd.f32 %v1565_v34, %v1564_v32 }
 0x7ab   :  { %v1562_v39 = vrot.slane %v1561_v37, 1  ;;  %v1567_v40 = vrot.slane %v1566_v38, 2 }
 0x7ad   :  { %v1563_v41 = vadd.f32 %v1562_v39, %v1561_v37  ;;  %v1568_v42 = vadd.f32 %v1567_v40, %v1566_v38  ;;  %v4072_v37 = vld [vmem:[%s5517_s9] ss:$0 sm:$0xff] }
 0x7af   :  { %4726 = vrcp.f32 %v1563_v41  ;;  %v1569_v43 = vrot.slane %v1568_v42, 1  ;;  %v4073_v41 = vld [vmem:[%s5518_s10] ss:$0 sm:$0xff] }
 0x7b1   :  { %v1570_v44 = vadd.f32 %v1569_v43, %v1568_v42 }
 0x7b3   :  { %4728 = vrcp.f32 %v1570_v44 }
 0x7b9   :  { %v4727_v45 = vpop.eup %4726 }
 0x7ba   :  { %v1573_v46 = vmul.f32 %v4727_v45, %v4723_v27 }
 0x7bc   :  { %4434 = vmatmul.mubr.msk.f32.vlgmr.msra.gmra.mrb[20].mxu1 %vm338_vm4, %v1573_v46  ;;  %v4674_v46 = vld [vmem:[%s5516_s13 + $0x30] sm:$0xff]  }
 0x7bd   :  { %v4729_v47 = vpop.eup %4728  ;;  %4445 = vmatprep.mubr.msk.bf16.mxu1 %vm4781_vm3, %v4780_v50  ;;  %4442 = vmatpush3.bf16.msra.mxu1 %v4664_v52 }
 0x7be   :  { %v1574_v48 = vmul.f32 %v4729_v47, %v4725_v30  ;;  %4443 = vmatprep.subr.bf16.mxu1 %v4780_v50  ;;  %v4675_v47 = vld [vmem:[%s5516_s13 + $0x38] sm:$0xff]  }
 0x7c0   :  { %4439 = vmatmul.mubr.msk.f32.vlgmr.msra.gmra.mrb[18].mxu0 %vm338_vm4, %v1574_v48  ;;  %v4074_v48 = vld [vmem:[%s5519_s12] ss:$0 sm:$0xff] }
 0x7c1   :  { %4453 = vmatprep.mubr.msk.bf16.mxu0 %vm4781_vm3, %v4780_v50  ;;  %4444 = vmatpush3.bf16.msra.mxu1 %v4665_v53 }
 0x7c2   :  { %4457 = vmatprep.subr.bf16.mxu1 %v4780_v50  ;;  %4450 = vmatpush3.bf16.msra.mxu0 %v4666_v19 }
 0x7c3   :  { %4451 = vmatprep.subr.bf16.mxu0 %v4780_v50 }
 0x7c6   :  { %4452 = vmatpush3.bf16.msra.mxu0 %v4667_v20 }
 0x7c7   :  { %4477 = vmatprep.subr.bf16.mxu0 %v4780_v50 }
 0x7f1   :  { %v1377_v49 = vpop.permute.xlu0 %1376 }
 0x7f2   :  { %1383 = vst.msk [vmem:[#allocation2] sm:$0xff] %vm1382_vm7, %v1377_v49 }
 0x7f5   :  { %v1379_v51 = vpop.permute.xlu1 %1378 }
 0x7f6   :  { %1384 = vst.msk [vmem:[#allocation2 + $0x8] sm:$0xff] %vm1382_vm7, %v1379_v51 }
 0x88f   :  { %v1647_v54 = vpop.f32.mrb[20].mxu1 }
 0x890   :  { %1729 = vrot.lane.b32.xlu0 %v1647_v54, %s4787_s20  ;;  %v4435_v55 = vpop.f32.mrb[21].mxu1 }
 0x893   :  { %v1723_v56 = vpop.f32.mrb[18].mxu0 }
 0x894   :  { %1731 = vrot.lane.b32.xlu1 %v1723_v56, %s4787_s20  ;;  %v4440_v57 = vpop.f32.mrb[19].mxu0 }
 0x902   :  { %v1730_v58 = vpop.permute.xlu0 %1729 }
 0x903   :  { %1736 = vst.msk [vmem:[#allocation2] sm:$0xff] %vm1735_vm8, %v1730_v58 }
 0x906   :  { %v1732_v59 = vpop.permute.xlu1 %1731 }
 0x907   :  { %1737 = vst.msk [vmem:[#allocation2 + $0x8] sm:$0xff] %vm1735_vm8, %v1732_v59 }
 0x90a   :  { %v1738_v60 = vld [vmem:[#allocation2] sm:$0xff] }
 0x90e   :  { %v1739_v61 = vld [vmem:[#allocation2 + $0x8] sm:$0xff] }
 0x90f   :  { %v1740_v62 = vpack.c.bf16 %v1739_v61, %v1738_v60  ;;  %v4086_v60 = vld [vmem:[%s5520_s14] ss:$0 sm:$0xff] }
 0x911   :  { %4446 = vmatmul.mubr.msk.bf16.vlgmr.msra.gmra.mrb[24].mxu1 %vm176_vm2, %v1740_v62 }
 0x912   :  { %4473 = vmatprep.mubr.msk.bf16.mxu1 %vm4781_vm3, %v4780_v50  ;;  %4458 = vmatpush3.bf16.msra.mxu1 %v4668_v21 }
 0x913   :  { %4459 = vmatprep.subr.bf16.mxu1 %v4780_v50 }
 0x916   :  { %4460 = vmatpush3.bf16.msra.mxu1 %v4669_v22 }
 0x917   :  { %4461 = vmatprep.subr.bf16.mxu1 %v4780_v50 }
 0x91a   :  { %4462 = vmatpush3.bf16.msra.mxu1 %v4670_v23 }
 0x91b   :  { %4463 = vmatprep.subr.bf16.mxu1 %v4780_v50 }
 0x91e   :  { %4464 = vmatpush3.bf16.msra.mxu1 %v4671_v24  ;;  %v4089_v24 = vld [vmem:[%s5511_s3 + $0x1] ss:$0 sm:$0xff] }
 0x91f   :  { %4465 = vmatprep.subr.bf16.mxu1 %v4780_v50 }
 0x922   :  { %4466 = vmatpush3.bf16.msra.mxu1 %v4672_v25 }
 0x923   :  { %4467 = vmatprep.subr.bf16.mxu1 %v4780_v50 }
 0x926   :  { %4468 = vmatpush3.bf16.msra.mxu1 %v4673_v26 }
 0x927   :  { %4469 = vmatprep.subr.bf16.mxu1 %v4780_v50 }
 0x92a   :  { %4470 = vmatpush3.bf16.msra.mxu1 %v4674_v46 }
 0x92b   :  { %4471 = vmatprep.subr.bf16.mxu1 %v4780_v50 }
 0x92e   :  { %4472 = vmatpush3.bf16.msra.mxu1 %v4675_v47 }
 0x92f   :  { %4513 = vmatprep.subr.mxu1 %v4780_v50 }
 0x9e4   :  { %v1794_v63 = vpop.f32.mrb[24].mxu1 }
 0x9e5   :  { %v1801_v1 = vadd.f32 %v1794_v63, %v4950_v35  ;;  %v4447_v2 = vpop.f32.mrb[25].mxu1 }
 0x9e6   :  { %v1797_v3 = vpop.f32.mrb[26].mxu1 }
 0x9e7   :  { %v5147_v4 = vadd.f32 %v4071_v0, %v1801_v1  ;;  %v1802_v5 = vadd.f32 %v1797_v3, %v4952_v36  ;;  %v4448_v6 = vpop.f32.mrb[27].mxu1 }
 0x9e9   :  { %v5150_v7 = vadd.f32 %v4071_v0, %v1802_v5  ;;  %v1814_v8 = vsel %vm176_vm2, %v5147_v4, 0.0 }
 0x9ea   :  { %1815 = vadd.xlane.f32.xlu0 %v1814_v8 }
 0x9eb   :  { %v1817_v9 = vsel %vm176_vm2, %v5150_v7, 0.0 }
 0x9ec   :  { %1818 = vadd.xlane.f32.xlu1 %v1817_v9 }
 0xa77   :  { %v1816_v10 = vpop.xlane.xlu0 %1815 }
 0xa78   :  { %v1820_v11 = vmul.f32 0.03125, %v1816_v10 }
 0xa79   :  { %v1819_v35 = vpop.xlane.xlu1 %1818 }
 0xa7a   :  { %v1822_v12 = vsub.f32 %v5147_v4, %v1820_v11  ;;  %v1821_v13 = vmul.f32 0.03125, %v1819_v35 }
 0xa7c   :  { %v1823_v14 = vsub.f32 %v5150_v7, %v1821_v13  ;;  %v1824_v36 = vmul.f32 %v1822_v12, %v1822_v12 }
 0xa7e   :  { %v1826_v15 = vsel %vm176_vm2, %v1824_v36, 0.0  ;;  %v1825_v17 = vmul.f32 %v1823_v14, %v1823_v14  ;;  %v4676_v36 = vld [vmem:[%s5536_s29 + $0x10] sm:$0xff]  }
 0xa7f   :  { %1827 = vadd.xlane.f32.xlu0 %v1826_v15  ;;  %v4677_v15 = vld [vmem:[%s5536_s29 + $0x18] sm:$0xff]  }
 0xa80   :  { %v1829_v18 = vsel %vm176_vm2, %v1825_v17, 0.0 }
 0xa83   :  { %1830 = vadd.xlane.f32.xlu0 %v1829_v18 }
 0xb0c   :  { %v1828_v27 = vpop.xlane.xlu0 %1827 }
 0xb0d   :  { %v1832_v28 = vmul.f32 0.03125, %v1828_v27 }
 0xb0f   :  { %v1834_v29 = vadd.f32 1e-05, %v1832_v28 }
 0xb10   :  { %v1831_v30 = vpop.xlane.xlu0 %1830 }
 0xb11   :  { %4730 = vrsqrt.f32 %v1834_v29  ;;  %v1833_v31 = vmul.f32 0.03125, %v1831_v30  ;;  %v4090_v29 = vld [vmem:[%s5512_s4 + $0x1] ss:$0 sm:$0xff] }
 0xb13   :  { %v1835_v32 = vadd.f32 1e-05, %v1833_v31 }
 0xb15   :  { %4732 = vrsqrt.f32 %v1835_v32 }
 0xb1b   :  { %v4731_v33 = vpop.eup %4730 }
 0xb1c   :  { %v1838_v34 = vmul.f32 %v4731_v33, %v1822_v12  ;;  %v4678_v33 = vld [vmem:[%s5510_s6 + $0x10] sm:$0xff]  }
 0xb1e   :  { %v1846_v39 = vmul.f32 %v4072_v37, %v1838_v34 }
 0xb1f   :  { %v4733_v38 = vpop.eup %4732 }
 0xb20   :  { %v1839_v40 = vmul.f32 %v4733_v38, %v1823_v14  ;;  %v1854_v43 = vadd.f32 %v4073_v41, %v1846_v39 }
 0xb22   :  { %v1847_v42 = vmul.f32 %v4072_v37, %v1839_v40  ;;  %v4679_v37 = vld [vmem:[%s5510_s6 + $0x18] sm:$0xff]  }
 0xb24   :  { %v1855_v44 = vadd.f32 %v4073_v41, %v1847_v42 }
 0xb26   :  { %v1856_v45 = vpack.c.bf16 %v1855_v44, %v1854_v43 }
 0xb28   :  { %4454 = vmatmul.mubr.msk.bf16.vlgmr.msra.gmra.mrb[20].mxu0 %vm176_vm2, %v1856_v45 }
 0xb29   :  { %4481 = vmatprep.mubr.msk.bf16.mxu0 %vm4781_vm3, %v4780_v50  ;;  %4478 = vmatpush3.bf16.msra.mxu0 %v4676_v36 }
 0xb2a   :  { %4479 = vmatprep.subr.bf16.mxu0 %v4780_v50 }
 0xb2d   :  { %4480 = vmatpush3.bf16.msra.mxu0 %v4677_v15 }
 0xb2e   :  { %4485 = vmatprep.subr.bf16.mxu0 %v4780_v50 }
 0xbfb   :  { %v1917_v49 = vpop.f32.mrb[20].mxu0 }
 0xbfc   :  { %v1918_v51 = vadd.f32 %v4074_v48, %v1917_v49  ;;  %v4455_v52 = vpop.f32.mrb[21].mxu0 }
 0xbfd   :  { %v1920_v53 = vpop.f32.mrb[22].mxu0 }
 0xbfe   :  { %v1921_v54 = vadd.f32 %v4074_v48, %v1920_v53  ;;  %v4456_v55 = vpop.f32.mrb[23].mxu0  ;;  %v1924_v56 = vmax.f32 %v1918_v51, 0.0 }
 0xc00   :  { %v1925_v57 = vmax.f32 %v1921_v54, 0.0 }
 0xc02   :  { %v1926_v58 = vpack.c.bf16 %v1925_v57, %v1924_v56 }
 0xc04   :  { %4474 = vmatmul.mubr.bf16.vlgmr.msra.gmra.mrb[28].mxu1 %v1926_v58 }
 0xc05   :  { %4515 = vmatprep.mubr.msk.f32.mxu1 %vm4781_vm3, %v4780_v50 }
 0xcd7   :  { %v2025_v59 = vpop.f32.mrb[28].mxu1 }
 0xcd8   :  { %v2032_v61 = vadd.f32 %v2025_v59, %v5147_v4  ;;  %v4475_v62 = vpop.f32.mrb[29].mxu1 }
 0xcd9   :  { %v2028_v63 = vpop.f32.mrb[30].mxu1 }
 0xcda   :  { %v5218_v0 = vadd.f32 %v4086_v60, %v2032_v61  ;;  %v2033_v1 = vadd.f32 %v2028_v63, %v5150_v7  ;;  %v4476_v2 = vpop.f32.mrb[31].mxu1 }
 0xcdc   :  { %v5221_v3 = vadd.f32 %v4086_v60, %v2033_v1  ;;  %v2047_v5 = vsel %vm176_vm2, %v5218_v0, 0.0 }
 0xcdd   :  { %2048 = vadd.xlane.f32.xlu1 %v2047_v5 }
 0xcde   :  { %v2050_v6 = vsel %vm176_vm2, %v5221_v3, 0.0 }
 0xcdf   :  { %2051 = vadd.xlane.f32.xlu0 %v2050_v6 }
 0xd6a   :  { %v2049_v8 = vpop.xlane.xlu1 %2048 }
 0xd6b   :  { %v2053_v9 = vmul.f32 0.03125, %v2049_v8 }
 0xd6c   :  { %v2052_v4 = vpop.xlane.xlu0 %2051 }
 0xd6d   :  { %v2055_v10 = vsub.f32 %v5218_v0, %v2053_v9  ;;  %v2054_v11 = vmul.f32 0.03125, %v2052_v4 }
 0xd6f   :  { %v2056_v35 = vsub.f32 %v5221_v3, %v2054_v11  ;;  %v2057_v7 = vmul.f32 %v2055_v10, %v2055_v10 }
 0xd71   :  { %v2059_v12 = vsel %vm176_vm2, %v2057_v7, 0.0  ;;  %v2058_v13 = vmul.f32 %v2056_v35, %v2056_v35 }
 0xd72   :  { %2060 = vadd.xlane.f32.xlu1 %v2059_v12 }
 0xd73   :  { %v2062_v14 = vsel %vm176_vm2, %v2058_v13, 0.0 }
 0xd74   :  { %2063 = vadd.xlane.f32.xlu0 %v2062_v14 }
 0xdff   :  { %v2061_v17 = vpop.xlane.xlu1 %2060 }
 0xe00   :  { %v2065_v18 = vmul.f32 0.03125, %v2061_v17 }
 0xe01   :  { %v2064_v19 = vpop.xlane.xlu0 %2063 }
 0xe02   :  { %v2067_v20 = vadd.f32 1e-05, %v2065_v18  ;;  %v2066_v21 = vmul.f32 0.03125, %v2064_v19 }
 0xe04   :  { %4734 = vrsqrt.f32 %v2067_v20  ;;  %v2068_v22 = vadd.f32 1e-05, %v2066_v21 }
 0xe06   :  { %4736 = vrsqrt.f32 %v2068_v22 }
 0xe0e   :  { %v4735_v23 = vpop.eup %4734 }
 0xe0f   :  { %v2071_v25 = vmul.f32 %v4735_v23, %v2055_v10 }
 0xe10   :  { %v4737_v26 = vpop.eup %4736 }
 0xe11   :  { %v2079_v27 = vmul.f32 %v4089_v24, %v2071_v25  ;;  %v2072_v28 = vmul.f32 %v4737_v26, %v2056_v35 }
 0xe13   :  { %v2080_v30 = vmul.f32 %v4089_v24, %v2072_v28  ;;  %v2087_v31 = vadd.f32 %v4090_v29, %v2079_v27 }
 0xe15   :  { %v2088_v32 = vadd.f32 %v4090_v29, %v2080_v30 }
 0xe17   :  { %v2089_v34 = vpack.c.bf16 %v2088_v32, %v2087_v31 }
 0xe19   :  { %4482 = vmatmul.mubr.msk.bf16.vlgmr.msra.gmra.mrb[24].mxu0 %vm176_vm2, %v2089_v34 }
 0xe1a   :  { %4486 = vmatpush3.bf16.msra.mxu0 %v4678_v33  ;;  %4489 = vmatprep.mubr.msk.bf16.mxu0 %vm4781_vm3, %v4780_v50 }
 0xe1b   :  { %4487 = vmatprep.subr.bf16.mxu0 %v4780_v50 }
 0xe1e   :  { %4488 = vmatpush3.bf16.msra.mxu0 %v4679_v37 }
 0xe1f   :  { %4493 = vmatprep.subr.mxu0 %v4780_v50 }
 0xe21   :  { %4490 = vmatmul.mubr.msk.bf16.vlgmr.msra.gmra.mrb[28].mxu0 %vm176_vm2, %v2089_v34 }
 0xe22   :  { %4495 = vmatprep.mubr.msk.f32.mxu0 %vm4781_vm3, %v4780_v50 }
 0xeec   :  { %v2144_v38 = vpop.f32.mrb[24].mxu0 }
 0xeed   :  { %2545 = vrot.lane.b32.xlu1 %v2144_v38, %s4783_s26  ;;  %v4483_v39 = vpop.f32.mrb[25].mxu0  ;;  %4494 = vmatpush3.xpose.msk.msra.mxu0 %vm338_vm4, %v2144_v38 }
 0xeee   :  { %v2147_v40 = vpop.f32.mrb[26].mxu0  ;;  %4498 = vmatprep.subr.mxu0 %v4780_v50 }
 0xeef   :  { %2619 = vrot.lane.b32.xlu0 %v2147_v40, %s4783_s26  ;;  %v4484_v41 = vpop.f32.mrb[27].mxu0 }
 0xef0   :  { %4496 = vmatmul.mubr.msk.f32.vlgmr.msra.gmra.mrb[32].mxu0 %vm338_vm4, %v2144_v38 }
 0xef1   :  { %4499 = vmatpush3.xpose.msk.msra.mxu0 %vm338_vm4, %v2147_v40  ;;  %4500 = vmatprep.mubr.msk.f32.mxu0 %vm4781_vm3, %v4780_v50 }
 0xef2   :  { %4503 = vmatprep.subr.mxu0 %v4780_v50 }
 0xef3   :  { %2899 = vrot.lane.b32.xlu0 %v2144_v38, %s4782_s5 }
 0xef4   :  { %v2202_v42 = vpop.f32.mrb[28].mxu0  ;;  %4501 = vmatmul.mubr.msk.f32.vlgmr.msra.gmra.mrb[34].mxu0 %vm338_vm4, %v2147_v40 }
 0xef5   :  { %2736 = vrot.lane.b32.xlu1 %v2202_v42, %s4783_s26  ;;  %v4491_v43 = vpop.f32.mrb[29].mxu0  ;;  %4504 = vmatpush3.msra.mxu0 %v2202_v42 }
 0xef6   :  { %v5271_v44 = vpop.f32.mrb[30].mxu0  ;;  %4505 = vmatprep.mubr.msk.f32.mxu0 %vm4781_vm3, %v4780_v50  ;;  %4508 = vmatprep.subr.mxu0 %v4780_v50 }
 0xef7   :  { %3089 = vrot.lane.b32.xlu0 %v2202_v42, %s4782_s5  ;;  %v4492_v45 = vpop.f32.mrb[31].mxu0 }
 0xef9   :  { %2813 = vrot.lane.b32.xlu1 %v5271_v44, %s4783_s26 }
 0xefb   :  { %3251 = vrot.lane.b32.xlu0 %v2144_v38, %s4784_s27 }
 0xefd   :  { %2973 = vrot.lane.b32.xlu1 %v2147_v40, %s4782_s5 }
 0xeff   :  { %3441 = vrot.lane.b32.xlu0 %v2202_v42, %s4784_s27 }
 0xf01   :  { %3165 = vrot.lane.b32.xlu1 %v5271_v44, %s4782_s5 }
 0xf05   :  { %3325 = vrot.lane.b32.xlu1 %v2147_v40, %s4784_s27 }
 0xf09   :  { %3517 = vrot.lane.b32.xlu1 %v5271_v44, %s4784_s27 }
 0xf5f   :  { %v2546_v46 = vpop.permute.xlu1 %2545 }
 0xf60   :  { %4514 = vmatpush3.xpose.msk.msra.mxu1 %vm338_vm4, %v2546_v46 }
 0xf61   :  { %4523 = vmatprep.subr.mxu1 %v4780_v50  ;;  %v2620_v32 = vpop.permute.xlu0 %2619 }
 0xf63   :  { %4516 = vmatmul.mubr.msk.f32.vlgmr.msra.gmra.mrb[22].mxu1 %vm338_vm4, %v2546_v46 }
 0xf64   :  { %4525 = vmatprep.mubr.msk.f32.mxu1 %vm4781_vm3, %v4780_v50 }
 0xf67   :  { %v2737_v47 = vpop.permute.xlu1 %2736 }
 0xf68   :  { %4524 = vmatpush3.msra.mxu1 %v2737_v47 }
 0xf69   :  { %4533 = vmatprep.subr.mxu1 %v4780_v50 }
 0xf6b   :  { %v2814_v33 = vpop.permute.xlu1 %2813 }
 0xfc3   :  { %v2278_v48 = vpop.f32.mrb[32].mxu0 }
 0xfc4   :  { %v2355_v49 = vmul.f32 0.17677669, %v2278_v48  ;;  %v4497_v51 = vpop.f32.mrb[33].mxu0 }
 0xfc6   :  { %v2357_v52 = vsel %vm5022_vm5, %v2355_v49, -1e+30 }
 0xfc7   :  { %v2359_v53 = vsel %vm338_vm4, %v2357_v52, -inf  ;;  %v2351_v54 = vpop.f32.mrb[34].mxu0 }
 0xfc8   :  { %v2360_v55 = vrot.slane %v2359_v53, 4  ;;  %v2356_v56 = vmul.f32 0.17677669, %v2351_v54  ;;  %v4502_v57 = vpop.f32.mrb[35].mxu0 }
 0xfca   :  { %v2361_v58 = vmax.f32 %v2359_v53, %v2360_v55  ;;  %v2358_v59 = vsel %vm5022_vm5, %v2356_v56, -1e+30 }
 0xfcb   :  { %v2366_v60 = vsel %vm338_vm4, %v2358_v59, -inf }
 0xfcc   :  { %v2362_v61 = vrot.slane %v2361_v58, 2  ;;  %v2367_v62 = vrot.slane %v2366_v60, 4 }
 0xfce   :  { %v2363_v63 = vmax.f32 %v2361_v58, %v2362_v61  ;;  %v2368_v1 = vmax.f32 %v2366_v60, %v2367_v62 }
 0xfd0   :  { %v2364_v2 = vrot.slane %v2363_v63, 1  ;;  %v2369_v5 = vrot.slane %v2368_v1, 2 }
 0xfd2   :  { %v2365_v6 = vmax.f32 %v2363_v63, %v2364_v2  ;;  %v2370_v8 = vmax.f32 %v2368_v1, %v2369_v5 }
 0xfd4   :  { %v2373_v9 = vsub.f32 %v2357_v52, %v2365_v6  ;;  %v2371_v4 = vrot.slane %v2370_v8, 1 }
 0xfd6   :  { %v2375_v10 = vmul.f32 1.442695, %v2373_v9  ;;  %v2372_v11 = vmax.f32 %v2370_v8, %v2371_v4 }
 0xfd8   :  { %4738 = vpow2.f32 %v2375_v10  ;;  %v2374_v35 = vsub.f32 %v2358_v59, %v2372_v11  ;;  %v2900_v59 = vpop.permute.xlu0 %2899 }
 0xfda   :  { %v2377_v7 = vmul.f32 1.442695, %v2374_v35 }
 0xfdc   :  { %4740 = vpow2.f32 %v2377_v7  ;;  %v3090_v61 = vpop.permute.xlu0 %3089 }
 0xfe2   :  { %v4739_v12 = vpop.eup %4738 }
 0xfe3   :  { %v2379_v13 = vsel %vm338_vm4, %v4739_v12, 0.0 }
 0xfe4   :  { %v2380_v14 = vrot.slane %v2379_v13, 4 }
 0xfe6   :  { %v4741_v36 = vpop.eup %4740  ;;  %v2381_v15 = vadd.f32 %v2380_v14, %v2379_v13 }
 0xfe7   :  { %v2386_v17 = vsel %vm338_vm4, %v4741_v36, 0.0 }
 0xfe8   :  { %v2382_v18 = vrot.slane %v2381_v15, 2  ;;  %v2387_v19 = vrot.slane %v2386_v17, 4 }
 0xfea   :  { %v2383_v20 = vadd.f32 %v2382_v18, %v2381_v15  ;;  %v2388_v21 = vadd.f32 %v2387_v19, %v2386_v17 }
 0xfec   :  { %v2384_v22 = vrot.slane %v2383_v20, 1  ;;  %v2389_v23 = vrot.slane %v2388_v21, 2 }
 0xfee   :  { %v2385_v24 = vadd.f32 %v2384_v22, %v2383_v20  ;;  %v2390_v25 = vadd.f32 %v2389_v23, %v2388_v21 }
 0xff0   :  { %4742 = vrcp.f32 %v2385_v24  ;;  %v2391_v26 = vrot.slane %v2390_v25, 1 }
 0xff2   :  { %v2392_v27 = vadd.f32 %v2391_v26, %v2390_v25  ;;  %v2974_v25 = vpop.permute.xlu1 %2973 }
 0xff4   :  { %4744 = vrcp.f32 %v2392_v27 }
 0xff6   :  { %v3166_v27 = vpop.permute.xlu1 %3165 }
 0xffa   :  { %v4743_v28 = vpop.eup %4742 }
 0xffb   :  { %v2395_v29 = vmul.f32 %v4743_v28, %v4739_v12 }
 0xffd   :  { %4506 = vmatmul.mubr.msk.f32.vlgmr.msra.gmra.mrb[36].mxu0 %vm338_vm4, %v2395_v29 }
 0xffe   :  { %v4745_v30 = vpop.eup %4744  ;;  %4509 = vmatpush3.msra.mxu0 %v5271_v44  ;;  %4510 = vmatprep.mubr.msk.f32.mxu0 %vm4781_vm3, %v4780_v50 }
 0xfff   :  { %v2396_v31 = vmul.f32 %v4745_v30, %v4741_v36  ;;  %4518 = vmatprep.subr.mxu0 %v4780_v50 }
0x1001   :  { %4511 = vmatmul.mubr.msk.f32.vlgmr.msra.gmra.mrb[38].mxu0 %vm338_vm4, %v2396_v31 }
0x1002   :  { %4520 = vmatprep.mubr.msk.f32.mxu0 %vm4781_vm3, %v4780_v50 }
0x1005   :  { %4519 = vmatpush3.xpose.msk.msra.mxu0 %vm338_vm4, %v2620_v32 }
0x1006   :  { %4528 = vmatprep.subr.mxu0 %v4780_v50 }
0x1008   :  { %4521 = vmatmul.mubr.msk.f32.vlgmr.msra.gmra.mrb[40].mxu0 %vm338_vm4, %v2620_v32 }
0x1009   :  { %4529 = vmatpush3.msra.mxu0 %v2814_v33  ;;  %4530 = vmatprep.mubr.msk.f32.mxu0 %vm4781_vm3, %v4780_v50 }
0x100a   :  { %4538 = vmatprep.subr.mxu0 %v4780_v50 }
0x1036   :  { %v2615_v34 = vpop.f32.mrb[22].mxu1 }
0x1037   :  { %v2693_v37 = vmul.f32 0.17677669, %v2615_v34  ;;  %v4517_v38 = vpop.f32.mrb[23].mxu1 }
0x1039   :  { %v2695_v39 = vsel %vm5022_vm5, %v2693_v37, -1e+30 }
0x103a   :  { %v2697_v40 = vsel %vm338_vm4, %v2695_v39, -inf }
0x103b   :  { %v2698_v41 = vrot.slane %v2697_v40, 4 }
0x103d   :  { %v2699_v42 = vmax.f32 %v2697_v40, %v2698_v41 }
0x103f   :  { %v2700_v43 = vrot.slane %v2699_v42, 2 }
0x1041   :  { %v2701_v44 = vmax.f32 %v2699_v42, %v2700_v43 }
0x1043   :  { %v2702_v45 = vrot.slane %v2701_v44, 1 }
0x1045   :  { %v2703_v46 = vmax.f32 %v2701_v44, %v2702_v45 }
0x1047   :  { %v2711_v47 = vsub.f32 %v2695_v39, %v2703_v46 }
0x1049   :  { %v2713_v48 = vmul.f32 1.442695, %v2711_v47 }
0x104b   :  { %4746 = vpow2.f32 %v2713_v48 }
0x1055   :  { %v4747_v49 = vpop.eup %4746 }
0x1056   :  { %v2717_v51 = vsel %vm338_vm4, %v4747_v49, 0.0 }
0x1057   :  { %v2718_v52 = vrot.slane %v2717_v51, 4 }
0x1059   :  { %v2719_v53 = vadd.f32 %v2718_v52, %v2717_v51 }
0x105b   :  { %v2720_v54 = vrot.slane %v2719_v53, 2 }
0x105d   :  { %v2721_v55 = vadd.f32 %v2720_v54, %v2719_v53 }
0x105f   :  { %v2722_v56 = vrot.slane %v2721_v55, 1 }
0x1061   :  { %v2723_v57 = vadd.f32 %v2722_v56, %v2721_v55  ;;  %v3252_v55 = vpop.permute.xlu0 %3251 }
0x1063   :  { %4748 = vrcp.f32 %v2723_v57 }
0x1065   :  { %v3442_v57 = vpop.permute.xlu0 %3441 }
0x106d   :  { %v4749_v58 = vpop.eup %4748 }
0x106e   :  { %v2733_v60 = vmul.f32 %v4749_v58, %v4747_v49 }
0x1070   :  { %4526 = vmatmul.mubr.msk.f32.vlgmr.msra.gmra.mrb[32].mxu1 %vm338_vm4, %v2733_v60 }
0x1071   :  { %4534 = vmatpush3.xpose.msk.msra.mxu1 %vm338_vm4, %v2900_v59  ;;  %4535 = vmatprep.mubr.msk.f32.mxu1 %vm4781_vm3, %v4780_v50 }
0x1072   :  { %4543 = vmatprep.subr.mxu1 %v4780_v50 }
0x1074   :  { %4536 = vmatmul.mubr.msk.f32.vlgmr.msra.gmra.mrb[34].mxu1 %vm338_vm4, %v2900_v59 }
0x1075   :  { %4544 = vmatpush3.msra.mxu1 %v3090_v61  ;;  %4545 = vmatprep.mubr.msk.f32.mxu1 %vm4781_vm3, %v4780_v50 }
0x1076   :  { %4553 = vmatprep.subr.mxu1 %v4780_v50 }
0x10d0   :  { %v2466_v62 = vpop.f32.mrb[36].mxu0 }
0x10d1   :  { %2543 = vst.msk [vmem:[#allocation2] sm:$0xff] %vm338_vm4, %v2466_v62  ;;  %v4507_v63 = vpop.f32.mrb[37].mxu0 }
0x10d4   :  { %v2539_v1 = vpop.f32.mrb[38].mxu0 }
0x10d5   :  { %2544 = vst.msk [vmem:[#allocation2 + $0x8] sm:$0xff] %vm338_vm4, %v2539_v1  ;;  %v4512_v2 = vpop.f32.mrb[39].mxu0 }
0x10db   :  { %v2689_v5 = vpop.f32.mrb[40].mxu0 }
0x10dc   :  { %v2694_v6 = vmul.f32 0.17677669, %v2689_v5  ;;  %v4522_v8 = vpop.f32.mrb[41].mxu0 }
0x10de   :  { %v2696_v9 = vsel %vm5022_vm5, %v2694_v6, -1e+30 }
0x10df   :  { %v2704_v4 = vsel %vm338_vm4, %v2696_v9, -inf }
0x10e0   :  { %v2705_v10 = vrot.slane %v2704_v4, 4 }
0x10e2   :  { %v2706_v11 = vmax.f32 %v2704_v4, %v2705_v10 }
0x10e4   :  { %v2707_v35 = vrot.slane %v2706_v11, 2 }
0x10e6   :  { %v2708_v7 = vmax.f32 %v2706_v11, %v2707_v35 }
0x10e8   :  { %v2709_v12 = vrot.slane %v2708_v7, 1 }
0x10ea   :  { %v2710_v13 = vmax.f32 %v2708_v7, %v2709_v12 }
0x10ec   :  { %v2712_v14 = vsub.f32 %v2696_v9, %v2710_v13 }
0x10ee   :  { %v2715_v36 = vmul.f32 1.442695, %v2712_v14 }
0x10f0   :  { %4750 = vpow2.f32 %v2715_v36 }
0x10fa   :  { %v4751_v15 = vpop.eup %4750 }
0x10fb   :  { %v2724_v17 = vsel %vm338_vm4, %v4751_v15, 0.0 }
0x10fc   :  { %v2725_v18 = vrot.slane %v2724_v17, 4 }
0x10fe   :  { %v2726_v19 = vadd.f32 %v2725_v18, %v2724_v17 }
0x1100   :  { %v2727_v20 = vrot.slane %v2726_v19, 2 }
0x1102   :  { %v2728_v21 = vadd.f32 %v2727_v20, %v2726_v19  ;;  %v3326_v20 = vpop.permute.xlu1 %3325 }
0x1104   :  { %v2729_v22 = vrot.slane %v2728_v21, 1 }
0x1106   :  { %v2730_v23 = vadd.f32 %v2729_v22, %v2728_v21  ;;  %v3518_v22 = vpop.permute.xlu1 %3517 }
0x1108   :  { %4752 = vrcp.f32 %v2730_v23 }
0x1112   :  { %v4753_v24 = vpop.eup %4752 }
0x1113   :  { %v2734_v26 = vmul.f32 %v4753_v24, %v4751_v15 }
0x1115   :  { %4531 = vmatmul.mubr.msk.f32.vlgmr.msra.gmra.mrb[42].mxu0 %vm338_vm4, %v2734_v26 }
0x1116   :  { %4539 = vmatpush3.xpose.msk.msra.mxu0 %vm338_vm4, %v2974_v25  ;;  %4540 = vmatprep.mubr.msk.f32.mxu0 %vm4781_vm3, %v4780_v50 }
0x1117   :  { %4548 = vmatprep.subr.mxu0 %v4780_v50 }
0x1119   :  { %4541 = vmatmul.mubr.msk.f32.vlgmr.msra.gmra.mrb[44].mxu0 %vm338_vm4, %v2974_v25 }
0x111a   :  { %4549 = vmatpush3.msra.mxu0 %v3166_v27  ;;  %4550 = vmatprep.mubr.msk.f32.mxu0 %vm4781_vm3, %v4780_v50 }
0x111b   :  { %4558 = vmatprep.subr.mxu0 %v4780_v50 }
0x1143   :  { %v2808_v28 = vpop.f32.mrb[32].mxu1 }
0x1144   :  { %2891 = vrot.lane.b32.xlu0 %v2808_v28, %s4785_s28  ;;  %v4527_v29 = vpop.f32.mrb[33].mxu1 }
0x1147   :  { %v2969_v30 = vpop.f32.mrb[34].mxu1 }
0x1148   :  { %v3047_v31 = vmul.f32 0.17677669, %v2969_v30  ;;  %v4537_v32 = vpop.f32.mrb[35].mxu1 }
0x114a   :  { %v3049_v33 = vsel %vm5022_vm5, %v3047_v31, -1e+30 }
0x114b   :  { %v3051_v34 = vsel %vm338_vm4, %v3049_v33, -inf }
0x114c   :  { %v3052_v37 = vrot.slane %v3051_v34, 4 }
0x114e   :  { %v3053_v38 = vmax.f32 %v3051_v34, %v3052_v37 }
0x1150   :  { %v3054_v39 = vrot.slane %v3053_v38, 2 }
0x1152   :  { %v3055_v40 = vmax.f32 %v3053_v38, %v3054_v39 }
0x1154   :  { %v3056_v41 = vrot.slane %v3055_v40, 1 }
0x1156   :  { %v3057_v42 = vmax.f32 %v3055_v40, %v3056_v41 }
0x1158   :  { %v3065_v43 = vsub.f32 %v3049_v33, %v3057_v42 }
0x115a   :  { %v3067_v44 = vmul.f32 1.442695, %v3065_v43 }
0x115c   :  { %4754 = vpow2.f32 %v3067_v44 }
0x1166   :  { %v4755_v45 = vpop.eup %4754 }
0x1167   :  { %v3071_v46 = vsel %vm338_vm4, %v4755_v45, 0.0 }
0x1168   :  { %v3072_v47 = vrot.slane %v3071_v46, 4 }
0x116a   :  { %v3073_v48 = vadd.f32 %v3072_v47, %v3071_v46 }
0x116c   :  { %v3074_v49 = vrot.slane %v3073_v48, 2 }
0x116e   :  { %v3075_v51 = vadd.f32 %v3074_v49, %v3073_v48 }
0x1170   :  { %v3076_v52 = vrot.slane %v3075_v51, 1 }
0x1172   :  { %v3077_v53 = vadd.f32 %v3076_v52, %v3075_v51 }
0x1174   :  { %4756 = vrcp.f32 %v3077_v53 }
0x117e   :  { %v4757_v54 = vpop.eup %4756 }
0x117f   :  { %v3087_v56 = vmul.f32 %v4757_v54, %v4755_v45 }
0x1181   :  { %4546 = vmatmul.mubr.msk.f32.vlgmr.msra.gmra.mrb[36].mxu1 %vm338_vm4, %v3087_v56 }
0x1182   :  { %4554 = vmatpush3.xpose.msk.msra.mxu1 %vm338_vm4, %v3252_v55  ;;  %4555 = vmatprep.mubr.msk.f32.mxu1 %vm4781_vm3, %v4780_v50 }
0x1183   :  { %4563 = vmatprep.subr.mxu1 %v4780_v50 }
0x1185   :  { %4556 = vmatmul.mubr.msk.f32.vlgmr.msra.gmra.mrb[38].mxu1 %vm338_vm4, %v3252_v55 }
0x1186   :  { %4564 = vmatpush3.msra.mxu1 %v3442_v57  ;;  %4565 = vmatprep.mubr.msk.f32.mxu1 %vm4781_vm3, %v4780_v50 }
0x1187   :  { %4573 = vmatprep.subr.bf16.mxu1 %v4780_v50 }
0x11b6   :  { %v2892_v58 = vpop.permute.xlu0 %2891 }
0x11b7   :  { %2897 = vst.msk [vmem:[#allocation2] sm:$0xff] %vm1029_vm6, %v2892_v58 }
0x11e8   :  { %v2885_v59 = vpop.f32.mrb[42].mxu0 }
0x11e9   :  { %2893 = vrot.lane.b32.xlu1 %v2885_v59, %s4785_s28  ;;  %v4532_v60 = vpop.f32.mrb[43].mxu0 }
0x11ec   :  { %v3043_v61 = vpop.f32.mrb[44].mxu0 }
0x11ed   :  { %v3048_v62 = vmul.f32 0.17677669, %v3043_v61  ;;  %v4542_v63 = vpop.f32.mrb[45].mxu0 }
0x11ef   :  { %v3050_v1 = vsel %vm5022_vm5, %v3048_v62, -1e+30 }
0x11f0   :  { %v3058_v2 = vsel %vm338_vm4, %v3050_v1, -inf }
0x11f1   :  { %v3059_v5 = vrot.slane %v3058_v2, 4 }
0x11f3   :  { %v3060_v6 = vmax.f32 %v3058_v2, %v3059_v5 }
0x11f5   :  { %v3061_v8 = vrot.slane %v3060_v6, 2 }
0x11f7   :  { %v3062_v9 = vmax.f32 %v3060_v6, %v3061_v8 }
0x11f9   :  { %v3063_v4 = vrot.slane %v3062_v9, 1 }
0x11fb   :  { %v3064_v10 = vmax.f32 %v3062_v9, %v3063_v4 }
0x11fd   :  { %v3066_v11 = vsub.f32 %v3050_v1, %v3064_v10 }
0x11ff   :  { %v3069_v35 = vmul.f32 1.442695, %v3066_v11 }
0x1201   :  { %4758 = vpow2.f32 %v3069_v35 }
0x120b   :  { %v4759_v7 = vpop.eup %4758 }
0x120c   :  { %v3078_v12 = vsel %vm338_vm4, %v4759_v7, 0.0 }
0x120d   :  { %v3079_v13 = vrot.slane %v3078_v12, 4 }
0x120f   :  { %v3080_v14 = vadd.f32 %v3079_v13, %v3078_v12 }
0x1211   :  { %v3081_v36 = vrot.slane %v3080_v14, 2 }
0x1213   :  { %v3082_v15 = vadd.f32 %v3081_v36, %v3080_v14 }
0x1215   :  { %v3083_v17 = vrot.slane %v3082_v15, 1 }
0x1217   :  { %v3084_v18 = vadd.f32 %v3083_v17, %v3082_v15 }
0x1219   :  { %4760 = vrcp.f32 %v3084_v18  ;;  %v4680_v18 = vld [vmem:[%s5513_s7 + $0x10] sm:$0xff]  }
0x1223   :  { %v4761_v19 = vpop.eup %4760 }
0x1224   :  { %v3088_v21 = vmul.f32 %v4761_v19, %v4759_v7  ;;  %v4681_v19 = vld [vmem:[%s5513_s7 + $0x18] sm:$0xff]  }
0x1226   :  { %4551 = vmatmul.mubr.msk.f32.vlgmr.msra.gmra.mrb[46].mxu0 %vm338_vm4, %v3088_v21 }
0x1227   :  { %4559 = vmatpush3.xpose.msk.msra.mxu0 %vm338_vm4, %v3326_v20  ;;  %4560 = vmatprep.mubr.msk.f32.mxu0 %vm4781_vm3, %v4780_v50 }
0x1228   :  { %4568 = vmatprep.subr.mxu0 %v4780_v50 }
0x122a   :  { %4561 = vmatmul.mubr.msk.f32.vlgmr.msra.gmra.mrb[48].mxu0 %vm338_vm4, %v3326_v20 }
0x122b   :  { %4569 = vmatpush3.msra.mxu0 %v3518_v22  ;;  %4570 = vmatprep.mubr.msk.f32.mxu0 %vm4781_vm3, %v4780_v50 }
0x122c   :  { %4581 = vmatprep.subr.bf16.mxu0 %v4780_v50 }
0x1254   :  { %v3161_v23 = vpop.f32.mrb[36].mxu1 }
0x1255   :  { %3243 = vrot.lane.b32.xlu0 %v3161_v23, %s4786_s0  ;;  %v4547_v24 = vpop.f32.mrb[37].mxu1 }
0x1258   :  { %v3321_v25 = vpop.f32.mrb[38].mxu1 }
0x1259   :  { %v3399_v26 = vmul.f32 0.17677669, %v3321_v25  ;;  %v4557_v27 = vpop.f32.mrb[39].mxu1 }
0x125a   :  { %v4137_v27 = vld [vmem:[%s5514_s8 + $0x1] ss:$0 sm:$0xff] }
0x125b   :  { %v3401_v28 = vsel %vm5022_vm5, %v3399_v26, -1e+30  ;;  %v2894_v29 = vpop.permute.xlu1 %2893 }
0x125c   :  { %v3403_v30 = vsel %vm338_vm4, %v3401_v28, -inf  ;;  %2898 = vst.msk [vmem:[#allocation2 + $0x8] sm:$0xff] %vm1029_vm6, %v2894_v29 }
0x125d   :  { %v3404_v31 = vrot.slane %v3403_v30, 4 }
0x125f   :  { %v3405_v32 = vmax.f32 %v3403_v30, %v3404_v31 }
0x1261   :  { %v3406_v33 = vrot.slane %v3405_v32, 2 }
0x1263   :  { %v3407_v34 = vmax.f32 %v3405_v32, %v3406_v33 }
0x1265   :  { %v3408_v37 = vrot.slane %v3407_v34, 1 }
0x1267   :  { %v3409_v38 = vmax.f32 %v3407_v34, %v3408_v37 }
0x1269   :  { %v3417_v39 = vsub.f32 %v3401_v28, %v3409_v38 }
0x126b   :  { %v3419_v40 = vmul.f32 1.442695, %v3417_v39 }
0x126d   :  { %4762 = vpow2.f32 %v3419_v40 }
0x1277   :  { %v4763_v41 = vpop.eup %4762 }
0x1278   :  { %v3423_v42 = vsel %vm338_vm4, %v4763_v41, 0.0 }
0x1279   :  { %v3424_v43 = vrot.slane %v3423_v42, 4 }
0x127b   :  { %v3425_v44 = vadd.f32 %v3424_v43, %v3423_v42 }
0x127d   :  { %v3426_v45 = vrot.slane %v3425_v44, 2 }
0x127f   :  { %v3427_v46 = vadd.f32 %v3426_v45, %v3425_v44 }
0x1281   :  { %v3428_v47 = vrot.slane %v3427_v46, 1 }
0x1283   :  { %v3429_v48 = vadd.f32 %v3428_v47, %v3427_v46  ;;  %v4682_v47 = vld [vmem:[%s5515_s11 + $0x10] sm:$0xff]  }
0x1285   :  { %4764 = vrcp.f32 %v3429_v48  ;;  %v4683_v48 = vld [vmem:[%s5515_s11 + $0x18] sm:$0xff]  }
0x128f   :  { %v4765_v49 = vpop.eup %4764 }
0x1290   :  { %v3439_v51 = vmul.f32 %v4765_v49, %v4763_v41  ;;  %v4684_v49 = vld [vmem:[%s5516_s13 + $0x40] sm:$0xff]  }
0x1292   :  { %4566 = vmatmul.mubr.msk.f32.vlgmr.msra.gmra.mrb[40].mxu1 %vm338_vm4, %v3439_v51  ;;  %v4685_v51 = vld [vmem:[%s5516_s13 + $0x48] sm:$0xff]  }
0x1293   :  { %4577 = vmatprep.mubr.msk.bf16.mxu1 %vm4781_vm3, %v4780_v50  ;;  %4574 = vmatpush3.bf16.msra.mxu1 %v4680_v18 }
0x1294   :  { %4575 = vmatprep.subr.bf16.mxu1 %v4780_v50 }
0x1297   :  { %4576 = vmatpush3.bf16.msra.mxu1 %v4681_v19 }
0x1298   :  { %4589 = vmatprep.subr.bf16.mxu1 %v4780_v50 }
0x12c7   :  { %v3244_v52 = vpop.permute.xlu0 %3243 }
0x12c8   :  { %3249 = vst.msk [vmem:[#allocation2] sm:$0xff] %vm1382_vm7, %v3244_v52  ;;  %v4686_v52 = vld [vmem:[%s5516_s13 + $0x50] sm:$0xff]  }
0x12f9   :  { %v3237_v53 = vpop.f32.mrb[46].mxu0 }
0x12fa   :  { %3245 = vrot.lane.b32.xlu1 %v3237_v53, %s4786_s0  ;;  %v4552_v54 = vpop.f32.mrb[47].mxu0  ;;  %v4687_v53 = vld [vmem:[%s5516_s13 + $0x58] sm:$0xff]  }
0x12fb   :  { %v4688_v54 = vld [vmem:[%s5516_s13 + $0x60] sm:$0xff]  }
0x12fd   :  { %v3395_v55 = vpop.f32.mrb[48].mxu0 }
0x12fe   :  { %v3400_v56 = vmul.f32 0.17677669, %v3395_v55  ;;  %v4562_v57 = vpop.f32.mrb[49].mxu0  ;;  %v4689_v55 = vld [vmem:[%s5516_s13 + $0x68] sm:$0xff]  }
0x1300   :  { %v3402_v58 = vsel %vm5022_vm5, %v3400_v56, -1e+30 }
0x1301   :  { %v3410_v59 = vsel %vm338_vm4, %v3402_v58, -inf }
0x1302   :  { %v3411_v60 = vrot.slane %v3410_v59, 4 }
0x1304   :  { %v3412_v61 = vmax.f32 %v3410_v59, %v3411_v60 }
0x1306   :  { %v3413_v62 = vrot.slane %v3412_v61, 2 }
0x1308   :  { %v3414_v63 = vmax.f32 %v3412_v61, %v3413_v62 }
0x130a   :  { %v3415_v1 = vrot.slane %v3414_v63, 1 }
0x130c   :  { %v3416_v2 = vmax.f32 %v3414_v63, %v3415_v1  ;;  %v4140_v1 = vld [vmem:[%s5517_s9 + $0x1] ss:$0 sm:$0xff] }
0x130e   :  { %v3418_v5 = vsub.f32 %v3402_v58, %v3416_v2 }
0x1310   :  { %v3421_v6 = vmul.f32 1.442695, %v3418_v5 }
0x1312   :  { %4766 = vpow2.f32 %v3421_v6 }
0x131c   :  { %v4767_v8 = vpop.eup %4766 }
0x131d   :  { %v3430_v9 = vsel %vm338_vm4, %v4767_v8, 0.0 }
0x131e   :  { %v3431_v4 = vrot.slane %v3430_v9, 4 }
0x1320   :  { %v3432_v10 = vadd.f32 %v3431_v4, %v3430_v9 }
0x1322   :  { %v3433_v11 = vrot.slane %v3432_v10, 2 }
0x1324   :  { %v3434_v35 = vadd.f32 %v3433_v11, %v3432_v10 }
0x1326   :  { %v3435_v16 = vrot.slane %v3434_v35, 1 }
0x1328   :  { %v3436_v7 = vadd.f32 %v3435_v16, %v3434_v35  ;;  %v4690_v35 = vld [vmem:[%s5516_s13 + $0x70] sm:$0xff]   ;;  %v4691_v16 = vld [vmem:[%s5516_s13 + $0x78] sm:$0xff]  }
0x132a   :  { %4768 = vrcp.f32 %v3436_v7  ;;  %v4147_v7 = vld [vmem:[%s5519_s12 + $0x1] ss:$0 sm:$0xff] }
0x1334   :  { %v4769_v12 = vpop.eup %4768 }
0x1335   :  { %v3440_v13 = vmul.f32 %v4769_v12, %v4767_v8  ;;  %v4141_v8 = vld [vmem:[%s5518_s10 + $0x1] ss:$0 sm:$0xff] }
0x1337   :  { %4571 = vmatmul.mubr.msk.f32.vlgmr.msra.gmra.mrb[50].mxu0 %vm338_vm4, %v3440_v13 }
0x1338   :  { %4585 = vmatprep.mubr.msk.bf16.mxu0 %vm4781_vm3, %v4780_v50  ;;  %4582 = vmatpush3.bf16.msra.mxu0 %v4682_v47 }
0x1339   :  { %4583 = vmatprep.subr.bf16.mxu0 %v4780_v50 }
0x133c   :  { %4584 = vmatpush3.bf16.msra.mxu0 %v4683_v48 }
0x133d   :  { %4609 = vmatprep.subr.bf16.mxu0 %v4780_v50 }
0x1365   :  { %v3513_v14 = vpop.f32.mrb[40].mxu1 }
0x1366   :  { %3595 = vrot.lane.b32.xlu0 %v3513_v14, %s4787_s20  ;;  %v4567_v36 = vpop.f32.mrb[41].mxu1 }
0x136c   :  { %v3246_v15 = vpop.permute.xlu1 %3245 }
0x136d   :  { %3250 = vst.msk [vmem:[#allocation2 + $0x8] sm:$0xff] %vm1382_vm7, %v3246_v15 }
0x13d8   :  { %v3596_v17 = vpop.permute.xlu0 %3595 }
0x13d9   :  { %3601 = vst.msk [vmem:[#allocation2] sm:$0xff] %vm1735_vm8, %v3596_v17 }
0x13e0   :  { %v3603_v23 = vld [vmem:[#allocation2] sm:$0xff] }
0x140a   :  { %v3589_v20 = vpop.f32.mrb[50].mxu0 }
0x140b   :  { %3597 = vrot.lane.b32.xlu1 %v3589_v20, %s4787_s20  ;;  %v4572_v21 = vpop.f32.mrb[51].mxu0 }
0x147d   :  { %v3598_v22 = vpop.permute.xlu1 %3597 }
0x147e   :  { %3602 = vst.msk [vmem:[#allocation2 + $0x8] sm:$0xff] %vm1735_vm8, %v3598_v22  ;;  %v4176_v22 = vld [vmem:[%s5520_s14 + $0x1] ss:$0 sm:$0xff] }
0x1485   :  { %v3604_v24 = vld [vmem:[#allocation2 + $0x8] sm:$0xff] }
0x1486   :  { %v3605_v25 = vpack.c.bf16 %v3604_v24, %v3603_v23 }
0x1488   :  { %4578 = vmatmul.mubr.msk.bf16.vlgmr.msra.gmra.mrb[44].mxu1 %vm176_vm2, %v3605_v25 }
0x1489   :  { %4605 = vmatprep.mubr.msk.bf16.mxu1 %vm4781_vm3, %v4780_v50  ;;  %4590 = vmatpush3.bf16.msra.mxu1 %v4684_v49 }
0x148a   :  { %4591 = vmatprep.subr.bf16.mxu1 %v4780_v50 }
0x148d   :  { %4592 = vmatpush3.bf16.msra.mxu1 %v4685_v51 }
0x148e   :  { %4593 = vmatprep.subr.bf16.mxu1 %v4780_v50 }
0x1491   :  { %4594 = vmatpush3.bf16.msra.mxu1 %v4686_v52  ;;  %v4177_v52 = vld [vmem:[%s5522_s15] ss:$0 sm:$0xff] }
0x1492   :  { %4595 = vmatprep.subr.bf16.mxu1 %v4780_v50 }
0x1495   :  { %4596 = vmatpush3.bf16.msra.mxu1 %v4687_v53 }
0x1496   :  { %4597 = vmatprep.subr.bf16.mxu1 %v4780_v50 }
0x1499   :  { %4598 = vmatpush3.bf16.msra.mxu1 %v4688_v54 }
0x149a   :  { %4599 = vmatprep.subr.bf16.mxu1 %v4780_v50 }
0x149d   :  { %4600 = vmatpush3.bf16.msra.mxu1 %v4689_v55 }
0x149e   :  { %4601 = vmatprep.subr.bf16.mxu1 %v4780_v50 }
0x14a1   :  { %4602 = vmatpush3.bf16.msra.mxu1 %v4690_v35 }
0x14a2   :  { %4603 = vmatprep.subr.bf16.mxu1 %v4780_v50 }
0x14a5   :  { %4604 = vmatpush3.bf16.msra.mxu1 %v4691_v16 }
0x155b   :  { %v3660_v26 = vpop.f32.mrb[44].mxu1 }
0x155c   :  { %v3667_v28 = vadd.f32 %v3660_v26, %v5218_v0  ;;  %v4579_v29 = vpop.f32.mrb[45].mxu1 }
0x155d   :  { %v3663_v30 = vpop.f32.mrb[46].mxu1 }
0x155e   :  { %v5410_v31 = vadd.f32 %v4137_v27, %v3667_v28  ;;  %v3668_v32 = vadd.f32 %v3663_v30, %v5221_v3  ;;  %v4580_v33 = vpop.f32.mrb[47].mxu1 }
0x1560   :  { %v5413_v34 = vadd.f32 %v4137_v27, %v3668_v32  ;;  %v3683_v37 = vsel %vm176_vm2, %v5410_v31, 0.0 }
0x1561   :  { %3684 = vadd.xlane.f32.xlu0 %v3683_v37 }
0x1562   :  { %v3686_v38 = vsel %vm176_vm2, %v5413_v34, 0.0 }
0x1563   :  { %3687 = vadd.xlane.f32.xlu1 %v3686_v38 }
0x15ee   :  { %v3685_v39 = vpop.xlane.xlu0 %3684 }
0x15ef   :  { %v3689_v40 = vmul.f32 0.03125, %v3685_v39 }
0x15f0   :  { %v3688_v0 = vpop.xlane.xlu1 %3687 }
0x15f1   :  { %v3691_v41 = vsub.f32 %v5410_v31, %v3689_v40  ;;  %v3690_v42 = vmul.f32 0.03125, %v3688_v0 }
0x15f3   :  { %v3692_v43 = vsub.f32 %v5413_v34, %v3690_v42  ;;  %v3693_v3 = vmul.f32 %v3691_v41, %v3691_v41 }
0x15f5   :  { %v3695_v44 = vsel %vm176_vm2, %v3693_v3, 0.0  ;;  %v3694_v45 = vmul.f32 %v3692_v43, %v3692_v43  ;;  %v4693_v3 = vld [vmem:[%s5521_s17 + $0x8] sm:$0xff]  }
0x15f6   :  { %3696 = vadd.xlane.f32.xlu0 %v3695_v44 }
0x15f7   :  { %v3698_v46 = vsel %vm176_vm2, %v3694_v45, 0.0 }
0x15fa   :  { %3699 = vadd.xlane.f32.xlu0 %v3698_v46 }
0x1683   :  { %v3697_v56 = vpop.xlane.xlu0 %3696 }
0x1684   :  { %v3701_v57 = vmul.f32 0.03125, %v3697_v56 }
0x1686   :  { %v3703_v58 = vadd.f32 1e-05, %v3701_v57 }
0x1687   :  { %v3700_v59 = vpop.xlane.xlu0 %3699 }
0x1688   :  { %4770 = vrsqrt.f32 %v3703_v58  ;;  %v3702_v60 = vmul.f32 0.03125, %v3700_v59 }
0x168a   :  { %v3704_v61 = vadd.f32 1e-05, %v3702_v60 }
0x168c   :  { %4772 = vrsqrt.f32 %v3704_v61  ;;  %v4179_v61 = vld [vmem:[%s5524_s18] ss:$0 sm:$0xff] }
0x1692   :  { %v4771_v62 = vpop.eup %4770 }
0x1693   :  { %v3707_v63 = vmul.f32 %v4771_v62, %v3691_v41 }
0x1695   :  { %v3715_v5 = vmul.f32 %v4140_v1, %v3707_v63 }
0x1696   :  { %v4773_v2 = vpop.eup %4772 }
0x1697   :  { %v3708_v6 = vmul.f32 %v4773_v2, %v3692_v43  ;;  %v3723_v4 = vadd.f32 %v4141_v8, %v3715_v5  ;;  %v4692_v43 = vld [vmem:[%s5521_s17] sm:$0xff]  }
0x1699   :  { %v3716_v9 = vmul.f32 %v4140_v1, %v3708_v6 }
0x169b   :  { %v3724_v10 = vadd.f32 %v4141_v8, %v3716_v9 }
0x169d   :  { %v3725_v11 = vpack.c.bf16 %v3724_v10, %v3723_v4 }
0x169f   :  { %4586 = vmatmul.mubr.msk.bf16.vlgmr.msra.gmra.mrb[52].mxu0 %vm176_vm2, %v3725_v11 }
0x16a0   :  { %4613 = vmatprep.mubr.msk.bf16.mxu0 %vm4781_vm3, %v4780_v50  ;;  %4610 = vmatpush3.bf16.msra.mxu0 %v4692_v43 }
0x16a1   :  { %4611 = vmatprep.subr.bf16.mxu0 %v4780_v50  ;;  %v4178_v50 = vld [vmem:[%s5523_s16] ss:$0 sm:$0xff] }
0x16a4   :  { %4612 = vmatpush3.bf16.msra.mxu0 %v4693_v3 }
0x1772   :  { %v3788_v12 = vpop.f32.mrb[52].mxu0 }
0x1773   :  { %v3789_v13 = vadd.f32 %v4147_v7, %v3788_v12  ;;  %v4587_v14 = vpop.f32.mrb[53].mxu0 }
0x1774   :  { %v3791_v36 = vpop.f32.mrb[54].mxu0 }
0x1775   :  { %v3792_v15 = vadd.f32 %v4147_v7, %v3791_v36  ;;  %v4588_v17 = vpop.f32.mrb[55].mxu0  ;;  %v3795_v18 = vmax.f32 %v3789_v13, 0.0 }
0x1777   :  { %v3796_v19 = vmax.f32 %v3792_v15, 0.0 }
0x1779   :  { %v3797_v20 = vpack.c.bf16 %v3796_v19, %v3795_v18 }
0x177b   :  { %4606 = vmatmul.mubr.bf16.vlgmr.msra.gmra.mrb[48].mxu1 %v3797_v20 }
0x184e   :  { %v3897_v21 = vpop.f32.mrb[48].mxu1 }
0x184f   :  { %v3904_v23 = vadd.f32 %v3897_v21, %v5410_v31  ;;  %v4607_v24 = vpop.f32.mrb[49].mxu1 }
0x1850   :  { %v3900_v25 = vpop.f32.mrb[50].mxu1 }
0x1851   :  { %v3905_v26 = vadd.f32 %v3900_v25, %v5413_v34  ;;  %v4608_v27 = vpop.f32.mrb[51].mxu1  ;;  %v3914_v28 = vadd.f32 %v4176_v22, %v3904_v23 }
0x1853   :  { %v3918_v29 = vsel %vm176_vm2, %v3914_v28, 0.0  ;;  %v3915_v30 = vadd.f32 %v4176_v22, %v3905_v26 }
0x1854   :  { %3919 = vadd.xlane.f32.xlu1 %v3918_v29 }
0x1855   :  { %v3921_v32 = vsel %vm176_vm2, %v3915_v30, 0.0 }
0x1856   :  { %3922 = vadd.xlane.f32.xlu0 %v3921_v32 }
0x18e1   :  { %v3920_v33 = vpop.xlane.xlu1 %3919 }
0x18e2   :  { %v3924_v37 = vmul.f32 0.03125, %v3920_v33 }
0x18e3   :  { %v3923_v38 = vpop.xlane.xlu0 %3922 }
0x18e4   :  { %v3926_v39 = vsub.f32 %v3914_v28, %v3924_v37  ;;  %v3925_v40 = vmul.f32 0.03125, %v3923_v38 }
0x18e6   :  { %v3927_v0 = vsub.f32 %v3915_v30, %v3925_v40  ;;  %v3928_v31 = vmul.f32 %v3926_v39, %v3926_v39 }
0x18e8   :  { %v3930_v41 = vsel %vm176_vm2, %v3928_v31, 0.0  ;;  %v3929_v42 = vmul.f32 %v3927_v0, %v3927_v0 }
0x18e9   :  { %3931 = vadd.xlane.f32.xlu1 %v3930_v41 }
0x18ea   :  { %v3933_v34 = vsel %vm176_vm2, %v3929_v42, 0.0 }
0x18eb   :  { %3934 = vadd.xlane.f32.xlu0 %v3933_v34 }
0x1976   :  { %v3932_v44 = vpop.xlane.xlu1 %3931 }
0x1977   :  { %v3936_v45 = vmul.f32 0.03125, %v3932_v44 }
0x1978   :  { %v3935_v46 = vpop.xlane.xlu0 %3934 }
0x1979   :  { %v3938_v47 = vadd.f32 1e-05, %v3936_v45  ;;  %v3937_v48 = vmul.f32 0.03125, %v3935_v46 }
0x197b   :  { %4774 = vrsqrt.f32 %v3938_v47  ;;  %v3939_v49 = vadd.f32 1e-05, %v3937_v48 }
0x197d   :  { %4776 = vrsqrt.f32 %v3939_v49 }
0x1985   :  { %v4775_v51 = vpop.eup %4774 }
0x1986   :  { %v3942_v53 = vmul.f32 %v4775_v51, %v3926_v39 }
0x1987   :  { %v4777_v54 = vpop.eup %4776 }
0x1988   :  { %v3950_v55 = vmul.f32 %v4177_v52, %v3942_v53  ;;  %v3943_v56 = vmul.f32 %v4777_v54, %v3927_v0 }
0x198a   :  { %v3951_v57 = vmul.f32 %v4177_v52, %v3943_v56  ;;  %v3958_v58 = vadd.f32 %v4178_v50, %v3950_v55 }
0x198c   :  { %v3959_v59 = vadd.f32 %v4178_v50, %v3951_v57 }
0x198e   :  { %v3960_v60 = vpack.c.bf16 %v3959_v59, %v3958_v58 }
0x1990   :  { %4614 = vmatmul.mubr.msk.bf16.vlgmr.msra.gmra.mrb[56].mxu0 %vm176_vm2, %v3960_v60 }
0x1a63   :  { %v4021_v62 = vpop.f32.mrb[56].mxu0 }
0x1a64   :  { %v4022_v63 = vadd.f32 %v4179_v61, %v4021_v62  ;;  %v4615_v1 = vpop.f32.mrb[57].mxu0 }
0x1a65   :  { %v4024_v2 = vpop.f32.mrb[58].mxu0 }
0x1a66   :  { %4028 = vst [vmem:[%s5525_s19] sm:$0xff] %v4022_v63  ;;  %v4025_v5 = vadd.f32 %v4179_v61, %v4024_v2  ;;  %v4616_v6 = vpop.f32.mrb[59].mxu0 }
0x1a68   :  { %4029 = vst [vmem:[%s5525_s19 + $0x8] sm:$0xff] %v4025_v5 }

</bundles_post_ra>
